<compile_context>
chip_gen: v5e
topology: v5e:2x2
jax: 0.10.0
libtpu: 0.0.40
codegen_flags: <defaults>
</compile_context>

<pallas_src>
import functools
from types import SimpleNamespace

import jax
import jax.numpy as jnp
import numpy as np
from jax.experimental import pallas as pl
from jax.experimental.pallas import tpu as pltpu


_VMEM_SPEC = pl.BlockSpec(memory_space=pltpu.MemorySpace.VMEM)


def _round_up(n, m):
    return ((n + m - 1) // m) * m


# ----------------------------------------------------------------------------
# Pallas kernels (everything fused, VMEM resident)
# ----------------------------------------------------------------------------
def _make_fused_kernel(n_conv):
    """refs = x, (conv_w_i, conv_b_i) * n_conv, fc_w, fc_b, ln_g, ln_b, out."""

    def kernel(*refs):
        x_ref = refs[0]
        o_ref = refs[-1]
        a = x_ref[...]                                    # [B, in_flat]
        idx = 1
        for _ in range(n_conv):
            w_ref, b_ref = refs[idx], refs[idx + 1]
            idx += 2
            a = jnp.dot(a, w_ref[...], preferred_element_type=jnp.float32)
            a = jnp.maximum(a + b_ref[...], 0.0)          # conv-as-matmul + ReLU
        wfc_ref, bfc_ref, g_ref, beta_ref = refs[idx:idx + 4]
        y = jnp.dot(a, wfc_ref[...], preferred_element_type=jnp.float32)
        y = y + bfc_ref[...]
        mean = jnp.mean(y, axis=-1, keepdims=True)
        var = jnp.mean((y - mean) ** 2, axis=-1, keepdims=True)   # biased, like torch LN
        y = (y - mean) * jax.lax.rsqrt(var + 1e-5)
        o_ref[...] = jnp.tanh(y * g_ref[...] + beta_ref[...]).astype(o_ref.dtype)

    return kernel


def _make_conv_stack_kernel(n_conv):
    """flatten=False path: refs = x, (conv_w_i, conv_b_i) * n_conv, out."""

    def kernel(*refs):
        x_ref = refs[0]
        o_ref = refs[-1]
        a = x_ref[...]
        idx = 1
        for _ in range(n_conv):
            w_ref, b_ref = refs[idx], refs[idx + 1]
            idx += 2
            a = jnp.dot(a, w_ref[...], preferred_element_type=jnp.float32)
            a = jnp.maximum(a + b_ref[...], 0.0)
        o_ref[...] = a.astype(o_ref.dtype)

    return kernel


# ----------------------------------------------------------------------------
# Init-time (host side) lowering of Conv2d to a dense matrix
# ----------------------------------------------------------------------------
def _conv_to_dense(weight, bias, stride, h, w, in_pad, out_pad):
    """Lower Conv2d(valid, stride) to a dense matrix on NCHW-flattened vectors.

    weight: [OC, Cin, KH, KW], bias: [OC]  (numpy, torch layout)
    Input flat index:  ci*h*w + iy*w + ix   (== torch NCHW flatten)
    Output flat index: oc*OH*OW + oy*OW + ox
    Returns (Wd [in_pad, out_pad], bd [1, out_pad], OH, OW).
    """
    oc_n, ci_n, kh, kw = weight.shape
    oh_n = (h - kh) // stride + 1
    ow_n = (w - kw) // stride + 1
    wd = np.zeros((in_pad, out_pad), dtype=np.float32)
    for oy in range(oh_n):
        for ox in range(ow_n):
            out_cols = np.arange(oc_n) * (oh_n * ow_n) + oy * ow_n + ox
            for ky in range(kh):
                for kx in range(kw):
                    iy = oy * stride + ky
                    ix = ox * stride + kx
                    in_rows = np.arange(ci_n) * (h * w) + iy * w + ix
                    wd[np.ix_(in_rows, out_cols)] = weight[:, :, ky, kx].T
    bd = np.zeros((1, out_pad), dtype=np.float32)
    bd[0, : oc_n * oh_n * ow_n] = np.repeat(bias, oh_n * ow_n)
    return wd, bd, oh_n, ow_n


def init_params(key, config, input_dim):
    """Returns (params, raw, meta).

    params : arrays only, already in the layout the kernel wants (jit-safe).
    raw    : torch-layout weights + static strides, for the pure-JAX reference.
    meta   : static shape info.
    """
    raw = {"convs": []}
    d_prev = input_dim
    d = config.encoder_conv_dim
    w = config.encoder_image_size
    for k, s in zip(config.encoder_kernel_size, config.encoder_stride):
        key, k1, k2 = jax.random.split(key, 3)
        fan_in = d_prev * int(k) * int(k)
        scale = 1.0 / np.sqrt(fan_in)
        raw["convs"].append({
            "weight": jax.random.normal(k1, (d, d_prev, int(k), int(k)), jnp.float32) * scale,
            "bias": jax.random.normal(k2, (d,), jnp.float32) * scale,
            "stride": int(s),            # static Python int, never passed through jit
        })
        w = int(np.floor((w - (int(k) - 1) - 1) / int(s) + 1))
        d_prev = d
    flat_dim = w * w * d
    out_dim = config.encoder_conv_output_dim
    key, k1, k2 = jax.random.split(key, 3)
    scale = 1.0 / np.sqrt(flat_dim)
    raw["fc_w"] = jax.random.normal(k1, (out_dim, flat_dim), jnp.float32) * scale
    raw["fc_b"] = jax.random.normal(k2, (out_dim,), jnp.float32) * scale
    raw["ln_g"] = jnp.ones((out_dim,), jnp.float32)
    raw["ln_b"] = jnp.zeros((out_dim,), jnp.float32)

    # ---- kernel-ready params: all layout / padding work done here, once ----
    conv_w, conv_b = [], []
    h_cur = int(config.encoder_image_size)
    in_cur = input_dim * h_cur * h_cur          # input is not padded (free reshape only)
    for layer in raw["convs"]:
        w_np = np.asarray(layer["weight"])
        b_np = np.asarray(layer["bias"])
        oc, _, kh, _ = w_np.shape
        s = layer["stride"]
        oh = (h_cur - kh) // s + 1
        out_pad = _round_up(oc * oh * oh, 128)  # lane-dense intermediate features
        wd, bd, oh, _ = _conv_to_dense(w_np, b_np, s, h_cur, h_cur, in_cur, out_pad)
        conv_w.append(jnp.asarray(wd))
        conv_b.append(jnp.asarray(bd))
        h_cur, in_cur = oh, out_pad

    fc_w_pad = np.zeros((in_cur, out_dim), dtype=np.float32)
    fc_w_pad[:flat_dim, :] = np.asarray(raw["fc_w"]).T          # [K(pad), N]
    params = {
        "conv_w": conv_w,
        "conv_b": conv_b,
        "fc_w": jnp.asarray(fc_w_pad),
        "fc_b": jnp.asarray(raw["fc_b"]).reshape(1, out_dim),
        "ln_g": jnp.asarray(raw["ln_g"]).reshape(1, out_dim),
        "ln_b": jnp.asarray(raw["ln_b"]).reshape(1, out_dim),
    }
    meta = {"conv_out": (d, w, w), "flat_dim": flat_dim, "out_dim": out_dim}
    return params, raw, meta


# ----------------------------------------------------------------------------
# Forward (one pallas_call; `flatten` / `conv_out` are static Python values)
# ----------------------------------------------------------------------------
def cnn_layer_forward(params, ob, flatten=True, conv_out=None):
    # TODO(synk): detach_conv (autograd detach) has no meaning in a forward-only kernel.
    n_conv = len(params["conv_w"])
    b = ob.shape[0]
    x_flat = ob.reshape(b, -1)            # NCHW flatten — free, no data movement

    conv_args = []
    for wd, bd in zip(params["conv_w"], params["conv_b"]):
        conv_args += [wd, bd]

    if flatten:
        out_dim = params["fc_b"].shape[1]
        return pl.pallas_call(
            _make_fused_kernel(n_conv),
            out_shape=jax.ShapeDtypeStruct((b, out_dim), ob.dtype),
            in_specs=[_VMEM_SPEC] * (1 + 2 * n_conv + 4),
            out_specs=_VMEM_SPEC,
        )(x_flat, *conv_args, params["fc_w"], params["fc_b"],
          params["ln_g"], params["ln_b"])

    # flatten=False: return the conv feature map in NCHW, like the torch module.
    if conv_out is None:
        raise ValueError("conv_out (C, H, W) must be given when flatten=False")
    out_pad = params["conv_b"][-1].shape[1]
    feats = pl.pallas_call(
        _make_conv_stack_kernel(n_conv),
        out_shape=jax.ShapeDtypeStruct((b, out_pad), ob.dtype),
        in_specs=[_VMEM_SPEC] * (1 + 2 * n_conv),
        out_specs=_VMEM_SPEC,
    )(x_flat, *conv_args)
    c, h, w = conv_out
    return feats[:, : c * h * w].reshape(b, c, h, w)


# ----------------------------------------------------------------------------
# Pure-JAX reference (for correctness check only; runs eagerly)
# ----------------------------------------------------------------------------
def cnn_layer_reference(raw, ob, flatten=True):
    out = ob
    for layer in raw["convs"]:
        out = jax.lax.conv_general_dilated(
            out, layer["weight"], (layer["stride"], layer["stride"]), "VALID",
            dimension_numbers=("NCHW", "OIHW", "NCHW"))
        out = jnp.maximum(out + layer["bias"][None, :, None, None], 0.0)
    if not flatten:
        return out
    out = out.reshape(out.shape[0], -1)
    out = out @ raw["fc_w"].T + raw["fc_b"]
    mean = out.mean(-1, keepdims=True)
    var = ((out - mean) ** 2).mean(-1, keepdims=True)
    out = (out - mean) * jax.lax.rsqrt(var + 1e-5)
    return jnp.tanh(out * raw["ln_g"] + raw["ln_b"])


if __name__ == "__main__":
    config = SimpleNamespace(
        encoder_conv_dim=8,
        encoder_image_size=16,
        encoder_kernel_size=[3, 3],
        encoder_stride=[2, 1],
        encoder_conv_output_dim=32,
    )
    input_dim = 4
    batch = 2

    key = jax.random.PRNGKey(0)
    key, pkey, xkey = jax.random.split(key, 3)
    params, raw, meta = init_params(pkey, config, input_dim)
    d_out, w_out, _ = meta["conv_out"]
    print("Output of CNN (%d) = %d x %d x %d" % (meta["flat_dim"], w_out, w_out, d_out))

    x = jax.random.normal(
        xkey,
        (batch, input_dim, config.encoder_image_size, config.encoder_image_size),
        jnp.float32)

    fwd = jax.jit(functools.partial(cnn_layer_forward, flatten=True))
    out = jax.block_until_ready(fwd(params, x))
    assert out.shape == (batch, config.encoder_conv_output_dim), out.shape
    assert bool(jnp.all(jnp.isfinite(out)))

    ref = cnn_layer_reference(raw, x, flatten=True)
    assert bool(jnp.allclose(out, ref, atol=2e-3, rtol=2e-3)), \
        float(jnp.max(jnp.abs(out - ref)))

    print("KERNEL_OK")
</pallas_src>

<mosaic_0001>
module attributes {stable_mosaic.version = 11 : i64} {
  func.func @kernel(%arg0: memref<2x1024xf32, #tpu.memory_space<vmem>>, %arg1: memref<1024x512xf32, #tpu.memory_space<vmem>>, %arg2: memref<1x512xf32, #tpu.memory_space<vmem>>, %arg3: memref<512x256xf32, #tpu.memory_space<vmem>>, %arg4: memref<1x256xf32, #tpu.memory_space<vmem>>, %arg5: memref<256x32xf32, #tpu.memory_space<vmem>>, %arg6: memref<1x32xf32, #tpu.memory_space<vmem>>, %arg7: memref<1x32xf32, #tpu.memory_space<vmem>>, %arg8: memref<1x32xf32, #tpu.memory_space<vmem>>, %arg9: memref<2x32xf32, #tpu.memory_space<vmem>>) attributes {dimension_semantics = [], scalar_prefetch = 0 : i64, scratch_operands = 0 : i64, tpu.core_type = #tpu.core_type<tc>} {
    %c0 = arith.constant 0 : index
    %c0_0 = arith.constant 0 : index
    %0 = vector.load %arg0[%c0, %c0_0] : memref<2x1024xf32, #tpu.memory_space<vmem>>, vector<2x1024xf32>
    %c0_1 = arith.constant 0 : index
    %c0_2 = arith.constant 0 : index
    %1 = vector.load %arg1[%c0_1, %c0_2] : memref<1024x512xf32, #tpu.memory_space<vmem>>, vector<1024x512xf32>
    %cst = arith.constant dense<0.000000e+00> : vector<2x512xf32>
    %2 = tpu.matmul %0, %1, %cst {dimension_numbers = #tpu.dot_dimension_numbers<[1], [0], [0], [1], [0, 0, 1, 1], [], []>} : vector<2x1024xf32>, vector<1024x512xf32>, vector<2x512xf32> -> vector<2x512xf32>
    %c0_3 = arith.constant 0 : index
    %c0_4 = arith.constant 0 : index
    %3 = vector.load %arg2[%c0_3, %c0_4] : memref<1x512xf32, #tpu.memory_space<vmem>>, vector<1x512xf32>
    %4 = vector.broadcast %3 : vector<1x512xf32> to vector<2x512xf32>
    %5 = arith.addf %2, %4 : vector<2x512xf32>
    %cst_5 = arith.constant 0.000000e+00 : f32
    %6 = vector.broadcast %cst_5 : f32 to vector<2x512xf32>
    %7 = arith.maximumf %5, %6 : vector<2x512xf32>
    %c0_6 = arith.constant 0 : index
    %c0_7 = arith.constant 0 : index
    %8 = vector.load %arg3[%c0_6, %c0_7] : memref<512x256xf32, #tpu.memory_space<vmem>>, vector<512x256xf32>
    %cst_8 = arith.constant dense<0.000000e+00> : vector<2x256xf32>
    %9 = tpu.matmul %7, %8, %cst_8 {dimension_numbers = #tpu.dot_dimension_numbers<[1], [0], [0], [1], [0, 0, 1, 1], [], []>} : vector<2x512xf32>, vector<512x256xf32>, vector<2x256xf32> -> vector<2x256xf32>
    %c0_9 = arith.constant 0 : index
    %c0_10 = arith.constant 0 : index
    %10 = vector.load %arg4[%c0_9, %c0_10] : memref<1x256xf32, #tpu.memory_space<vmem>>, vector<1x256xf32>
    %11 = vector.broadcast %10 : vector<1x256xf32> to vector<2x256xf32>
    %12 = arith.addf %9, %11 : vector<2x256xf32>
    %cst_11 = arith.constant 0.000000e+00 : f32
    %13 = vector.broadcast %cst_11 : f32 to vector<2x256xf32>
    %14 = arith.maximumf %12, %13 : vector<2x256xf32>
    %c0_12 = arith.constant 0 : index
    %c0_13 = arith.constant 0 : index
    %15 = vector.load %arg5[%c0_12, %c0_13] : memref<256x32xf32, #tpu.memory_space<vmem>>, vector<256x32xf32>
    %cst_14 = arith.constant dense<0.000000e+00> : vector<2x32xf32>
    %16 = tpu.matmul %14, %15, %cst_14 {dimension_numbers = #tpu.dot_dimension_numbers<[1], [0], [0], [1], [0, 0, 1, 1], [], []>} : vector<2x256xf32>, vector<256x32xf32>, vector<2x32xf32> -> vector<2x32xf32>
    %c0_15 = arith.constant 0 : index
    %c0_16 = arith.constant 0 : index
    %17 = vector.load %arg6[%c0_15, %c0_16] : memref<1x32xf32, #tpu.memory_space<vmem>>, vector<1x32xf32>
    %18 = vector.broadcast %17 : vector<1x32xf32> to vector<2x32xf32>
    %19 = arith.addf %16, %18 : vector<2x32xf32>
    %cst_17 = arith.constant dense<0.000000e+00> : vector<2xf32>
    %20 = vector.multi_reduction <add>, %19, %cst_17 [1] : vector<2x32xf32> to vector<2xf32>
    %21 = vector.shape_cast %20 : vector<2xf32> to vector<2x1xf32>
    %cst_18 = arith.constant 3.200000e+01 : f32
    %22 = vector.broadcast %cst_18 : f32 to vector<2x1xf32>
    %23 = arith.divf %21, %22 : vector<2x1xf32>
    %24 = vector.broadcast %23 : vector<2x1xf32> to vector<2x32xf32>
    %25 = arith.subf %19, %24 : vector<2x32xf32>
    %26 = arith.mulf %25, %25 : vector<2x32xf32>
    %cst_19 = arith.constant dense<0.000000e+00> : vector<2xf32>
    %27 = vector.multi_reduction <add>, %26, %cst_19 [1] : vector<2x32xf32> to vector<2xf32>
    %28 = vector.shape_cast %27 : vector<2xf32> to vector<2x1xf32>
    %cst_20 = arith.constant 3.200000e+01 : f32
    %29 = vector.broadcast %cst_20 : f32 to vector<2x1xf32>
    %30 = arith.divf %28, %29 : vector<2x1xf32>
    %31 = vector.broadcast %23 : vector<2x1xf32> to vector<2x32xf32>
    %32 = arith.subf %19, %31 : vector<2x32xf32>
    %cst_21 = arith.constant 9.99999974E-6 : f32
    %33 = vector.broadcast %cst_21 : f32 to vector<2x1xf32>
    %34 = arith.addf %30, %33 : vector<2x1xf32>
    %35 = math.rsqrt %34 : vector<2x1xf32>
    %36 = vector.broadcast %35 : vector<2x1xf32> to vector<2x32xf32>
    %37 = arith.mulf %32, %36 : vector<2x32xf32>
    %c0_22 = arith.constant 0 : index
    %c0_23 = arith.constant 0 : index
    %38 = vector.load %arg7[%c0_22, %c0_23] : memref<1x32xf32, #tpu.memory_space<vmem>>, vector<1x32xf32>
    %39 = vector.broadcast %38 : vector<1x32xf32> to vector<2x32xf32>
    %40 = arith.mulf %37, %39 : vector<2x32xf32>
    %c0_24 = arith.constant 0 : index
    %c0_25 = arith.constant 0 : index
    %41 = vector.load %arg8[%c0_24, %c0_25] : memref<1x32xf32, #tpu.memory_space<vmem>>, vector<1x32xf32>
    %42 = vector.broadcast %41 : vector<1x32xf32> to vector<2x32xf32>
    %43 = arith.addf %40, %42 : vector<2x32xf32>
    %44 = math.tanh %43 : vector<2x32xf32>
    %c0_26 = arith.constant 0 : index
    %c0_27 = arith.constant 0 : index
    %45 = vector.load %arg9[%c0_26, %c0_27] : memref<2x32xf32, #tpu.memory_space<vmem>>, vector<2x32xf32>
    tpu.vector_store %arg9[%c0_26, %c0_27], %44 {strides = array<i32>} : memref<2x32xf32, #tpu.memory_space<vmem>>, vector<2x32xf32>,
    return
  }
}

</mosaic_0001>

<bundles_post_ra>
// kernel: cnn_layer_forward.1
= control target key start
LH: loop header
LB: loop body
LE: loop exit
PB: predicated region body
PF: predicated region fallthrough
CT: control target
= control target key end

     0   :  { %14 = vsyncpa [#allocation3], 0  ;;  %s2269_s0 = inlined_call_operand.vmem [shape: f32[2,1024], index: 0, kind: input, shape index: {}]   ;;  %s2270_s1 = inlined_call_operand.hbm [shape: f32[1024,512], index: 1, kind: input, shape index: {}]   ;;  %s2271_s2 = inlined_call_operand.hbm [shape: f32[1,512], index: 2, kind: input, shape index: {}]   ;;  %s2272_s3 = inlined_call_operand.hbm [shape: f32[512,256], index: 3, kind: input, shape index: {}]   ;;  %s2273_s4 = inlined_call_operand.hbm [shape: f32[1,256], index: 4, kind: input, shape index: {}]   ;;  %s2274_s5 = inlined_call_operand.vmem [shape: f32[256,32], index: 5, kind: input, shape index: {}]   ;;  %s2275_s6 = inlined_call_operand.hbm [shape: f32[1,32], index: 6, kind: input, shape index: {}]   ;;  %s2276_s7 = inlined_call_operand.hbm [shape: f32[1,32], index: 7, kind: input, shape index: {}]   ;;  %s2277_s8 = inlined_call_operand.hbm [shape: f32[1,32], index: 8, kind: input, shape index: {}]   ;;  %s2278_s9 = inlined_call_operand.hbm [shape: f32[2,32], index: 9, kind: output, shape index: {}]  }
   0x1   :  { %15 = vsyncpa [#allocation6], 0 }
   0x2   :  { %16 = vsyncpa [#allocation9], 0 }
   0x3   :  { %17 = vsyncpa [#allocation12], 0  ;;  %s39_s11 = sshll.u32 %s2271_s2, 4  ;;  %s40_s11 = int_to_ptr.hbm [resolvable:$true] %s39_s11 }
   0x4   :  { %18 = vsyncpa [#allocation4], 0  ;;  %s1987_s12 = smov [#allocation5]   ;;  %s63_s16 = sshll.u32 %s2273_s4, 4  ;;  %s64_s16 = int_to_ptr.hbm [resolvable:$true] %s63_s16 }
   0x5   :  { %s41_s13 = sshll.u32 %s1987_s12, 4  ;;  %s1988_s17 = smov [#allocation8]   ;;  %s42_s13 = int_to_ptr.vmem [resolvable:$true] %s41_s13 }
   0x6   :  { %44 = dma.hbm_to_vmem [thread:$0]  %s40_s11, 64, %s42_s13, [#allocation6]  }
   0x7   :  { %s65_s18 = sshll.u32 %s1988_s17, 4  ;;  %s87_s21 = sshll.u32 %s2276_s7, 4  ;;  %s66_s18 = int_to_ptr.vmem [resolvable:$true] %s65_s18  ;;  %s88_s21 = int_to_ptr.hbm [resolvable:$true] %s87_s21 }
   0x8   :  { %68 = dma.hbm_to_vmem [thread:$0]  %s64_s16, 32, %s66_s18, [#allocation9]  }
   0x9   :  { %s25_s23 = sshll.u32 %s2270_s1, 4  ;;  %s1989_s24 = smov [#allocation11]   ;;  %s26_s23 = int_to_ptr.hbm [resolvable:$true] %s25_s23 }
   0xa   :  { %s89_s25 = sshll.u32 %s1989_s24, 4  ;;  %s1990_s4 = smov [#allocation2]   ;;  %s90_s25 = int_to_ptr.vmem [resolvable:$true] %s89_s25 }
   0xb   :  { %92 = dma.hbm_to_vmem [thread:$0]  %s88_s21, 16, %s90_s25, [#allocation12]  }
   0xc   :  { %s27_s26 = sshll.u32 %s1990_s4, 4  ;;  %s1991_s27 = smov 512   ;;  %s28_s26 = int_to_ptr.vmem [resolvable:$true] %s27_s26 }
   0xd   :  { %s1992_s28 = smov 32   ;;  %s49_s30 = sshll.u32 %s2272_s3, 4  ;;  %s50_s30 = int_to_ptr.hbm [resolvable:$true] %s49_s30 }
   0xe   :  { %33 = dma.hbm_to_vmem [thread:$0]  %s26_s23, 65536, %s28_s26, [#allocation3], %s1991_s27, %s1991_s27, %s1992_s28  }
   0xf   :  { %s1993_s10 = smov [#allocation7]   ;;  %s76_s13 = sshll.u32 %s2275_s6, 4  ;;  %s77_s13 = int_to_ptr.hbm [resolvable:$true] %s76_s13 }
  0x10   :  { %s51_s11 = sshll.u32 %s1993_s10, 4  ;;  %s1994_s14 = smov 256   ;;  %s52_s11 = int_to_ptr.vmem [resolvable:$true] %s51_s11 }
  0x11   :  { %s1995_s15 = smov 16   ;;  %s1996_s16 = smov [#allocation10]  }
  0x12   :  { %57 = dma.hbm_to_vmem [thread:$0]  %s50_s30, 16384, %s52_s11, [#allocation6], %s1994_s14, %s1994_s14, %s1995_s15  }
  0x13   :  { %s78_s17 = sshll.u32 %s1996_s16, 4  ;;  %s98_s20 = sshll.u32 %s2277_s8, 4  ;;  %s79_s17 = int_to_ptr.vmem [resolvable:$true] %s78_s17  ;;  %s99_s20 = int_to_ptr.hbm [resolvable:$true] %s98_s20 }
  0x14   :  { %81 = dma.hbm_to_vmem [thread:$0]  %s77_s13, 16, %s79_s17, [#allocation9]  }
  0x15   :  { %s1997_s3 = smov [#allocation13]  }
  0x16   :  { %s100_s21 = sshll.u32 %s1997_s3, 4  ;;  %s101_s21 = int_to_ptr.vmem [resolvable:$true] %s100_s21 }
  0x17   :  { %103 = dma.hbm_to_vmem [thread:$0]  %s99_s20, 16, %s101_s21, [#allocation12]  }
  0x18   :  { %1977 = dma.done.wait [#allocation3], 65536  }
  0x19   :  { %1978 = vsyncadd [#allocation3], 4294901760 }
  0x1a   :  { %1979 = dma.done.wait [#allocation6], 16448  }
  0x1b   :  { %1980 = vsyncadd [#allocation6], 4294950848 }
  0x1c   :  { %1981 = dma.done.wait [#allocation9], 48  }
  0x1d   :  { %1982 = vsyncadd [#allocation9], 4294967248 }
  0x1e   :  { %1983 = dma.done.wait [#allocation12], 32  }
  0x1f   :  { %1984 = vsyncadd [#allocation12], 4294967264  ;;  %v194_v0 = vld [vmem:[#allocation2 + $0x1e0] sm:$0xff]  ;;  %vm1693_vm0 = vcmask 254976   ;;  %s1742_s7 = sshll.u32 %s2278_s9, 4  ;;  %s1743_s7 = int_to_ptr.hbm [resolvable:$true] %s1742_s7 }
  0x20   :  { %v258_v1 = vld [vmem:[#allocation2 + $0x3e0] sm:$0xff]  ;;  %677 = vmatpush.msra.mxu0 %v194_v0 }
  0x21   :  { %v322_v2 = vld [vmem:[#allocation2 + $0x5e0] sm:$0xff]  ;;  %697 = vmatpush.msra.mxu1 %v258_v1 }
  0x22   :  { %v190_v3 = vld [vmem:[#allocation2 + $0x1c0] sm:$0xff]  ;;  %717 = vmatpush.msra.mxu2 %v322_v2 }
  0x23   :  { %v254_v4 = vld [vmem:[#allocation2 + $0x3c0] sm:$0xff]  ;;  %678 = vmatpush.msra.mxu0 %v190_v3 }
  0x24   :  { %v318_v5 = vld [vmem:[#allocation2 + $0x5c0] sm:$0xff]  ;;  %698 = vmatpush.msra.mxu1 %v254_v4 }
  0x25   :  { %v386_v6 = vld [vmem:[#allocation2 + $0x7e0] sm:$0xff]  ;;  %718 = vmatpush.msra.mxu2 %v318_v5 }
  0x26   :  { %v186_v7 = vld [vmem:[#allocation2 + $0x1a0] sm:$0xff]  ;;  %737 = vmatpush.msra.mxu3 %v386_v6 }
  0x27   :  { %v250_v8 = vld [vmem:[#allocation2 + $0x3a0] sm:$0xff]  ;;  %679 = vmatpush.msra.mxu0 %v186_v7 }
  0x28   :  { %v314_v9 = vld [vmem:[#allocation2 + $0x5a0] sm:$0xff]  ;;  %699 = vmatpush.msra.mxu1 %v250_v8 }
  0x29   :  { %v382_v10 = vld [vmem:[#allocation2 + $0x7c0] sm:$0xff]  ;;  %719 = vmatpush.msra.mxu2 %v314_v9 }
  0x2a   :  { %v182_v11 = vld [vmem:[#allocation2 + $0x180] sm:$0xff]  ;;  %738 = vmatpush.msra.mxu3 %v382_v10 }
  0x2b   :  { %v246_v12 = vld [vmem:[#allocation2 + $0x380] sm:$0xff]  ;;  %680 = vmatpush.msra.mxu0 %v182_v11 }
  0x2c   :  { %v310_v13 = vld [vmem:[#allocation2 + $0x580] sm:$0xff]  ;;  %700 = vmatpush.msra.mxu1 %v246_v12 }
  0x2d   :  { %v378_v14 = vld [vmem:[#allocation2 + $0x7a0] sm:$0xff]  ;;  %720 = vmatpush.msra.mxu2 %v310_v13 }
  0x2e   :  { %v178_v15 = vld [vmem:[#allocation2 + $0x160] sm:$0xff]  ;;  %739 = vmatpush.msra.mxu3 %v378_v14 }
  0x2f   :  { %v242_v16 = vld [vmem:[#allocation2 + $0x360] sm:$0xff]  ;;  %681 = vmatpush.msra.mxu0 %v178_v15 }
  0x30   :  { %v306_v17 = vld [vmem:[#allocation2 + $0x560] sm:$0xff]  ;;  %701 = vmatpush.msra.mxu1 %v242_v16 }
  0x31   :  { %v374_v18 = vld [vmem:[#allocation2 + $0x780] sm:$0xff]  ;;  %721 = vmatpush.msra.mxu2 %v306_v17 }
  0x32   :  { %v174_v19 = vld [vmem:[#allocation2 + $0x140] sm:$0xff]  ;;  %740 = vmatpush.msra.mxu3 %v374_v18 }
  0x33   :  { %v238_v20 = vld [vmem:[#allocation2 + $0x340] sm:$0xff]  ;;  %682 = vmatpush.msra.mxu0 %v174_v19 }
  0x34   :  { %v302_v21 = vld [vmem:[#allocation2 + $0x540] sm:$0xff]  ;;  %702 = vmatpush.msra.mxu1 %v238_v20 }
  0x35   :  { %v370_v22 = vld [vmem:[#allocation2 + $0x760] sm:$0xff]  ;;  %722 = vmatpush.msra.mxu2 %v302_v21 }
  0x36   :  { %v170_v23 = vld [vmem:[#allocation2 + $0x120] sm:$0xff]  ;;  %741 = vmatpush.msra.mxu3 %v370_v22 }
  0x37   :  { %v234_v24 = vld [vmem:[#allocation2 + $0x320] sm:$0xff]  ;;  %683 = vmatpush.msra.mxu0 %v170_v23 }
  0x38   :  { %v298_v25 = vld [vmem:[#allocation2 + $0x520] sm:$0xff]  ;;  %703 = vmatpush.msra.mxu1 %v234_v24 }
  0x39   :  { %v366_v26 = vld [vmem:[#allocation2 + $0x740] sm:$0xff]  ;;  %723 = vmatpush.msra.mxu2 %v298_v25  ;;  %v132_v25 = vld [vmem:[%s2269_s0] sm:$0xff] }
  0x3a   :  { %v166_v27 = vld [vmem:[#allocation2 + $0x100] sm:$0xff]  ;;  %742 = vmatpush.msra.mxu3 %v366_v26  ;;  %658 = vst [vmem:[#allocation1] ss:$4 sm:$0xff] %v132_v25  ;;  %v375_v25 = vld [vmem:[#allocation2 + $0x788] sm:$0xff] }
  0x3b   :  { %v230_v28 = vld [vmem:[#allocation2 + $0x300] sm:$0xff]  ;;  %684 = vmatpush.msra.mxu0 %v166_v27 }
  0x3c   :  { %v294_v29 = vld [vmem:[#allocation2 + $0x500] sm:$0xff]  ;;  %704 = vmatpush.msra.mxu1 %v230_v28 }
  0x3d   :  { %v362_v30 = vld [vmem:[#allocation2 + $0x720] sm:$0xff]  ;;  %724 = vmatpush.msra.mxu2 %v294_v29 }
  0x3e   :  { %v162_v31 = vld [vmem:[#allocation2 + $0xe0] sm:$0xff]  ;;  %743 = vmatpush.msra.mxu3 %v362_v30 }
  0x3f   :  { %v226_v32 = vld [vmem:[#allocation2 + $0x2e0] sm:$0xff]  ;;  %685 = vmatpush.msra.mxu0 %v162_v31 }
  0x40   :  { %v290_v33 = vld [vmem:[#allocation2 + $0x4e0] sm:$0xff]  ;;  %705 = vmatpush.msra.mxu1 %v226_v32 }
  0x41   :  { %v358_v34 = vld [vmem:[#allocation2 + $0x700] sm:$0xff]  ;;  %725 = vmatpush.msra.mxu2 %v290_v33 }
  0x42   :  { %v158_v35 = vld [vmem:[#allocation2 + $0xc0] sm:$0xff]  ;;  %744 = vmatpush.msra.mxu3 %v358_v34 }
  0x43   :  { %v222_v36 = vld [vmem:[#allocation2 + $0x2c0] sm:$0xff]  ;;  %686 = vmatpush.msra.mxu0 %v158_v35 }
  0x44   :  { %v286_v37 = vld [vmem:[#allocation2 + $0x4c0] sm:$0xff]  ;;  %706 = vmatpush.msra.mxu1 %v222_v36 }
  0x45   :  { %v354_v38 = vld [vmem:[#allocation2 + $0x6e0] sm:$0xff]  ;;  %726 = vmatpush.msra.mxu2 %v286_v37 }
  0x46   :  { %v154_v39 = vld [vmem:[#allocation2 + $0xa0] sm:$0xff]  ;;  %745 = vmatpush.msra.mxu3 %v354_v38 }
  0x47   :  { %v218_v40 = vld [vmem:[#allocation2 + $0x2a0] sm:$0xff]  ;;  %687 = vmatpush.msra.mxu0 %v154_v39 }
  0x48   :  { %v282_v41 = vld [vmem:[#allocation2 + $0x4a0] sm:$0xff]  ;;  %707 = vmatpush.msra.mxu1 %v218_v40 }
  0x49   :  { %v350_v42 = vld [vmem:[#allocation2 + $0x6c0] sm:$0xff]  ;;  %727 = vmatpush.msra.mxu2 %v282_v41 }
  0x4a   :  { %v150_v43 = vld [vmem:[#allocation2 + $0x80] sm:$0xff]  ;;  %746 = vmatpush.msra.mxu3 %v350_v42 }
  0x4b   :  { %v214_v44 = vld [vmem:[#allocation2 + $0x280] sm:$0xff]  ;;  %688 = vmatpush.msra.mxu0 %v150_v43 }
  0x4c   :  { %v278_v45 = vld [vmem:[#allocation2 + $0x480] sm:$0xff]  ;;  %708 = vmatpush.msra.mxu1 %v214_v44 }
  0x4d   :  { %v346_v46 = vld [vmem:[#allocation2 + $0x6a0] sm:$0xff]  ;;  %728 = vmatpush.msra.mxu2 %v278_v45 }
  0x4e   :  { %v146_v47 = vld [vmem:[#allocation2 + $0x60] sm:$0xff]  ;;  %747 = vmatpush.msra.mxu3 %v346_v46 }
  0x4f   :  { %v210_v48 = vld [vmem:[#allocation2 + $0x260] sm:$0xff]  ;;  %689 = vmatpush.msra.mxu0 %v146_v47 }
  0x50   :  { %v274_v49 = vld [vmem:[#allocation2 + $0x460] sm:$0xff]  ;;  %709 = vmatpush.msra.mxu1 %v210_v48 }
  0x51   :  { %v342_v50 = vld [vmem:[#allocation2 + $0x680] sm:$0xff]  ;;  %729 = vmatpush.msra.mxu2 %v274_v49 }
  0x52   :  { %v142_v51 = vld [vmem:[#allocation2 + $0x40] sm:$0xff]  ;;  %748 = vmatpush.msra.mxu3 %v342_v50 }
  0x53   :  { %v206_v52 = vld [vmem:[#allocation2 + $0x240] sm:$0xff]  ;;  %690 = vmatpush.msra.mxu0 %v142_v51 }
  0x54   :  { %v270_v53 = vld [vmem:[#allocation2 + $0x440] sm:$0xff]  ;;  %710 = vmatpush.msra.mxu1 %v206_v52 }
  0x55   :  { %v338_v54 = vld [vmem:[#allocation2 + $0x660] sm:$0xff]  ;;  %730 = vmatpush.msra.mxu2 %v270_v53 }
  0x56   :  { %v138_v55 = vld [vmem:[#allocation2 + $0x20] sm:$0xff]  ;;  %749 = vmatpush.msra.mxu3 %v338_v54 }
  0x57   :  { %v202_v56 = vld [vmem:[#allocation2 + $0x220] sm:$0xff]  ;;  %691 = vmatpush.msra.mxu0 %v138_v55 }
  0x58   :  { %v266_v57 = vld [vmem:[#allocation2 + $0x420] sm:$0xff]  ;;  %711 = vmatpush.msra.mxu1 %v202_v56 }
  0x59   :  { %v334_v58 = vld [vmem:[#allocation2 + $0x640] sm:$0xff]  ;;  %731 = vmatpush.msra.mxu2 %v266_v57 }
  0x5a   :  { %v134_v59 = vld [vmem:[#allocation2] sm:$0xff]  ;;  %750 = vmatpush.msra.mxu3 %v334_v58 }
  0x5b   :  { %v198_v60 = vld [vmem:[#allocation2 + $0x200] sm:$0xff]  ;;  %692 = vmatpush.msra.mxu0 %v134_v59 }
  0x5c   :  { %v262_v61 = vld [vmem:[#allocation2 + $0x400] sm:$0xff]  ;;  %712 = vmatpush.msra.mxu1 %v198_v60 }
  0x5d   :  { %v330_v62 = vld [vmem:[#allocation2 + $0x620] sm:$0xff]  ;;  %732 = vmatpush.msra.mxu2 %v262_v61 }
  0x5e   :  { %v450_v63 = vld [vmem:[#allocation2 + $0x9e0] sm:$0xff]  ;;  %751 = vmatpush.msra.mxu3 %v330_v62 }
  0x5f   :  { %v514_v0 = vld [vmem:[#allocation2 + $0xbe0] sm:$0xff]  ;;  %757 = vmatpush.msrb.mxu0 %v450_v63 }
  0x60   :  { %v578_v1 = vld [vmem:[#allocation2 + $0xde0] sm:$0xff]  ;;  %777 = vmatpush.msrb.mxu1 %v514_v0 }
  0x61   :  { %v326_v2 = vld [vmem:[#allocation2 + $0x600] sm:$0xff]  ;;  %797 = vmatpush.msrb.mxu2 %v578_v1  ;;  %v2077_v1 = vld.sshfl [vmem:[#allocation1] sm:$0xff pattern:$0x73625140] }
  0x62   :  { %v446_v3 = vld [vmem:[#allocation2 + $0x9c0] sm:$0xff]  ;;  %752 = vmatpush.msra.mxu3 %v326_v2  ;;  %693 = vmatmul.f32.vlgmr.msra.gmra.mxu0 %v2077_v1 }
  0x63   :  { %v510_v4 = vld [vmem:[#allocation2 + $0xbc0] sm:$0xff]  ;;  %758 = vmatpush.msrb.mxu0 %v446_v3  ;;  %v2081_v3 = vld.sshfl [vmem:[#allocation1 + $0x10] sm:$0xff pattern:$0x73625140] }
  0x64   :  { %v574_v5 = vld [vmem:[#allocation2 + $0xdc0] sm:$0xff]  ;;  %778 = vmatpush.msrb.mxu1 %v510_v4  ;;  %v195_v4 = vld [vmem:[#allocation2 + $0x1e8] sm:$0xff]  ;;  %733 = vmatmul.f32.vlgmr.msra.gmra.mxu2 %v2081_v3 }
  0x65   :  { %v642_v6 = vld [vmem:[#allocation2 + $0xfe0] sm:$0xff]  ;;  %798 = vmatpush.msrb.mxu2 %v574_v5  ;;  %v259_v5 = vld [vmem:[#allocation2 + $0x3e8] sm:$0xff] }
  0x66   :  { %v442_v7 = vld [vmem:[#allocation2 + $0x9a0] sm:$0xff]  ;;  %817 = vmatpush.msrb.mxu3 %v642_v6  ;;  %v323_v6 = vld [vmem:[#allocation2 + $0x5e8] sm:$0xff] }
  0x67   :  { %v506_v8 = vld [vmem:[#allocation2 + $0xba0] sm:$0xff]  ;;  %759 = vmatpush.msrb.mxu0 %v442_v7 }
  0x68   :  { %v570_v9 = vld [vmem:[#allocation2 + $0xda0] sm:$0xff]  ;;  %779 = vmatpush.msrb.mxu1 %v506_v8  ;;  %v191_v8 = vld [vmem:[#allocation2 + $0x1c8] sm:$0xff] }
  0x69   :  { %v638_v10 = vld [vmem:[#allocation2 + $0xfc0] sm:$0xff]  ;;  %799 = vmatpush.msrb.mxu2 %v570_v9  ;;  %v2086_v9 = vld.sshfl [vmem:[#allocation1 + $0x18] sm:$0xff pattern:$0x73625140] }
  0x6a   :  { %v438_v11 = vld [vmem:[#allocation2 + $0x980] sm:$0xff]  ;;  %818 = vmatpush.msrb.mxu3 %v638_v10  ;;  %v255_v10 = vld [vmem:[#allocation2 + $0x3c8] sm:$0xff] }
  0x6b   :  { %v502_v12 = vld [vmem:[#allocation2 + $0xb80] sm:$0xff]  ;;  %760 = vmatpush.msrb.mxu0 %v438_v11  ;;  %v319_v11 = vld [vmem:[#allocation2 + $0x5c8] sm:$0xff]  ;;  %753 = vmatmul.f32.vlgmr.msra.gmra.mxu3 %v2086_v9 }
  0x6c   :  { %v566_v13 = vld [vmem:[#allocation2 + $0xd80] sm:$0xff]  ;;  %780 = vmatpush.msrb.mxu1 %v502_v12  ;;  %v387_v12 = vld [vmem:[#allocation2 + $0x7e8] sm:$0xff] }
  0x6d   :  { %v634_v14 = vld [vmem:[#allocation2 + $0xfa0] sm:$0xff]  ;;  %800 = vmatpush.msrb.mxu2 %v566_v13  ;;  %v187_v13 = vld [vmem:[#allocation2 + $0x1a8] sm:$0xff] }
  0x6e   :  { %v434_v15 = vld [vmem:[#allocation2 + $0x960] sm:$0xff]  ;;  %819 = vmatpush.msrb.mxu3 %v634_v14  ;;  %v251_v14 = vld [vmem:[#allocation2 + $0x3a8] sm:$0xff] }
  0x6f   :  { %v498_v16 = vld [vmem:[#allocation2 + $0xb60] sm:$0xff]  ;;  %761 = vmatpush.msrb.mxu0 %v434_v15  ;;  %v315_v15 = vld [vmem:[#allocation2 + $0x5a8] sm:$0xff] }
  0x70   :  { %v562_v17 = vld [vmem:[#allocation2 + $0xd60] sm:$0xff]  ;;  %781 = vmatpush.msrb.mxu1 %v498_v16  ;;  %v383_v16 = vld [vmem:[#allocation2 + $0x7c8] sm:$0xff] }
  0x71   :  { %v630_v18 = vld [vmem:[#allocation2 + $0xf80] sm:$0xff]  ;;  %801 = vmatpush.msrb.mxu2 %v562_v17  ;;  %v183_v17 = vld [vmem:[#allocation2 + $0x188] sm:$0xff] }
  0x72   :  { %v430_v19 = vld [vmem:[#allocation2 + $0x940] sm:$0xff]  ;;  %820 = vmatpush.msrb.mxu3 %v630_v18  ;;  %v247_v18 = vld [vmem:[#allocation2 + $0x388] sm:$0xff] }
  0x73   :  { %v494_v20 = vld [vmem:[#allocation2 + $0xb40] sm:$0xff]  ;;  %762 = vmatpush.msrb.mxu0 %v430_v19  ;;  %v311_v19 = vld [vmem:[#allocation2 + $0x588] sm:$0xff] }
  0x74   :  { %v558_v21 = vld [vmem:[#allocation2 + $0xd40] sm:$0xff]  ;;  %782 = vmatpush.msrb.mxu1 %v494_v20  ;;  %v379_v20 = vld [vmem:[#allocation2 + $0x7a8] sm:$0xff] }
  0x75   :  { %v626_v22 = vld [vmem:[#allocation2 + $0xf60] sm:$0xff]  ;;  %802 = vmatpush.msrb.mxu2 %v558_v21 }
  0x76   :  { %v426_v23 = vld [vmem:[#allocation2 + $0x920] sm:$0xff]  ;;  %821 = vmatpush.msrb.mxu3 %v626_v22  ;;  %v179_v22 = vld [vmem:[#allocation2 + $0x168] sm:$0xff] }
  0x77   :  { %v490_v24 = vld [vmem:[#allocation2 + $0xb20] sm:$0xff]  ;;  %763 = vmatpush.msrb.mxu0 %v426_v23  ;;  %v243_v23 = vld [vmem:[#allocation2 + $0x368] sm:$0xff] }
  0x78   :  { %v554_v26 = vld [vmem:[#allocation2 + $0xd20] sm:$0xff]  ;;  %783 = vmatpush.msrb.mxu1 %v490_v24  ;;  %v307_v24 = vld [vmem:[#allocation2 + $0x568] sm:$0xff] }
  0x79   :  { %v622_v27 = vld [vmem:[#allocation2 + $0xf40] sm:$0xff]  ;;  %803 = vmatpush.msrb.mxu2 %v554_v26 }
  0x7a   :  { %v422_v28 = vld [vmem:[#allocation2 + $0x900] sm:$0xff]  ;;  %822 = vmatpush.msrb.mxu3 %v622_v27 }
  0x7b   :  { %v486_v29 = vld [vmem:[#allocation2 + $0xb00] sm:$0xff]  ;;  %764 = vmatpush.msrb.mxu0 %v422_v28  ;;  %v175_v28 = vld [vmem:[#allocation2 + $0x148] sm:$0xff] }
  0x7c   :  { %v550_v30 = vld [vmem:[#allocation2 + $0xd00] sm:$0xff]  ;;  %784 = vmatpush.msrb.mxu1 %v486_v29  ;;  %v239_v29 = vld [vmem:[#allocation2 + $0x348] sm:$0xff] }
  0x7d   :  { %v618_v31 = vld [vmem:[#allocation2 + $0xf20] sm:$0xff]  ;;  %804 = vmatpush.msrb.mxu2 %v550_v30  ;;  %v303_v30 = vld [vmem:[#allocation2 + $0x548] sm:$0xff] }
  0x7e   :  { %v418_v32 = vld [vmem:[#allocation2 + $0x8e0] sm:$0xff]  ;;  %823 = vmatpush.msrb.mxu3 %v618_v31  ;;  %v371_v31 = vld [vmem:[#allocation2 + $0x768] sm:$0xff] }
  0x7f   :  { %v482_v33 = vld [vmem:[#allocation2 + $0xae0] sm:$0xff]  ;;  %765 = vmatpush.msrb.mxu0 %v418_v32 }
  0x80   :  { %v546_v34 = vld [vmem:[#allocation2 + $0xce0] sm:$0xff]  ;;  %785 = vmatpush.msrb.mxu1 %v482_v33  ;;  %v171_v33 = vld [vmem:[#allocation2 + $0x128] sm:$0xff] }
  0x81   :  { %v614_v35 = vld [vmem:[#allocation2 + $0xf00] sm:$0xff]  ;;  %805 = vmatpush.msrb.mxu2 %v546_v34  ;;  %v235_v34 = vld [vmem:[#allocation2 + $0x328] sm:$0xff] }
  0x82   :  { %v414_v36 = vld [vmem:[#allocation2 + $0x8c0] sm:$0xff]  ;;  %824 = vmatpush.msrb.mxu3 %v614_v35  ;;  %v299_v35 = vld [vmem:[#allocation2 + $0x528] sm:$0xff] }
  0x83   :  { %v478_v37 = vld [vmem:[#allocation2 + $0xac0] sm:$0xff]  ;;  %766 = vmatpush.msrb.mxu0 %v414_v36  ;;  %v367_v36 = vld [vmem:[#allocation2 + $0x748] sm:$0xff] }
  0x84   :  { %v133_v38 = vld [vmem:[%s2269_s0 + $0x8] sm:$0xff]  ;;  %786 = vmatpush.msrb.mxu1 %v478_v37  ;;  %v167_v37 = vld [vmem:[#allocation2 + $0x108] sm:$0xff] }
  0x85   :  { %v542_v39 = vld [vmem:[#allocation2 + $0xcc0] sm:$0xff]  ;;  %660 = vst [vmem:[#allocation1 + $0x20] ss:$4 sm:$0xff] %v133_v38  ;;  %v231_v38 = vld [vmem:[#allocation2 + $0x308] sm:$0xff] }
  0x86   :  { %v610_v40 = vld [vmem:[#allocation2 + $0xee0] sm:$0xff]  ;;  %806 = vmatpush.msrb.mxu2 %v542_v39  ;;  %v295_v39 = vld [vmem:[#allocation2 + $0x508] sm:$0xff] }
  0x87   :  { %v410_v41 = vld [vmem:[#allocation2 + $0x8a0] sm:$0xff]  ;;  %825 = vmatpush.msrb.mxu3 %v610_v40  ;;  %v363_v40 = vld [vmem:[#allocation2 + $0x728] sm:$0xff] }
  0x88   :  { %v474_v42 = vld [vmem:[#allocation2 + $0xaa0] sm:$0xff]  ;;  %767 = vmatpush.msrb.mxu0 %v410_v41  ;;  %v163_v41 = vld [vmem:[#allocation2 + $0xe8] sm:$0xff] }
  0x89   :  { %v538_v43 = vld [vmem:[#allocation2 + $0xca0] sm:$0xff]  ;;  %787 = vmatpush.msrb.mxu1 %v474_v42  ;;  %v227_v42 = vld [vmem:[#allocation2 + $0x2e8] sm:$0xff] }
  0x8a   :  { %v606_v44 = vld [vmem:[#allocation2 + $0xec0] sm:$0xff]  ;;  %807 = vmatpush.msrb.mxu2 %v538_v43  ;;  %v291_v43 = vld [vmem:[#allocation2 + $0x4e8] sm:$0xff] }
  0x8b   :  { %v406_v45 = vld [vmem:[#allocation2 + $0x880] sm:$0xff]  ;;  %826 = vmatpush.msrb.mxu3 %v606_v44  ;;  %v359_v44 = vld [vmem:[#allocation2 + $0x708] sm:$0xff] }
  0x8c   :  { %v470_v46 = vld [vmem:[#allocation2 + $0xa80] sm:$0xff]  ;;  %768 = vmatpush.msrb.mxu0 %v406_v45  ;;  %v2089_v21 = vld.sshfl [vmem:[#allocation1 + $0x30] sm:$0xff pattern:$0x73625140] }
  0x8d   :  { %v534_v47 = vld [vmem:[#allocation2 + $0xc80] sm:$0xff]  ;;  %788 = vmatpush.msrb.mxu1 %v470_v46  ;;  %v2091_v26 = vld.sshfl [vmem:[#allocation1 + $0x20] sm:$0xff pattern:$0x73625140]  ;;  %v159_v45 = vld [vmem:[#allocation2 + $0xc8] sm:$0xff] }
  0x8e   :  { %v602_v48 = vld [vmem:[#allocation2 + $0xea0] sm:$0xff]  ;;  %808 = vmatpush.msrb.mxu2 %v534_v47  ;;  %v2094_v27 = vld.sshfl [vmem:[#allocation1 + $0x38] sm:$0xff pattern:$0x73625140]  ;;  %v223_v46 = vld [vmem:[#allocation2 + $0x2c8] sm:$0xff] }
  0x8f   :  { %v402_v49 = vld [vmem:[#allocation2 + $0x860] sm:$0xff]  ;;  %827 = vmatpush.msrb.mxu3 %v602_v48  ;;  %v287_v47 = vld [vmem:[#allocation2 + $0x4c8] sm:$0xff] }
  0x90   :  { %v466_v50 = vld [vmem:[#allocation2 + $0xa60] sm:$0xff]  ;;  %769 = vmatpush.msrb.mxu0 %v402_v49  ;;  %v355_v48 = vld [vmem:[#allocation2 + $0x6e8] sm:$0xff] }
  0x91   :  { %v530_v51 = vld [vmem:[#allocation2 + $0xc60] sm:$0xff]  ;;  %789 = vmatpush.msrb.mxu1 %v466_v50  ;;  %v155_v49 = vld [vmem:[#allocation2 + $0xa8] sm:$0xff] }
  0x92   :  { %v598_v52 = vld [vmem:[#allocation2 + $0xe80] sm:$0xff]  ;;  %809 = vmatpush.msrb.mxu2 %v530_v51  ;;  %v219_v50 = vld [vmem:[#allocation2 + $0x2a8] sm:$0xff] }
  0x93   :  { %v398_v53 = vld [vmem:[#allocation2 + $0x840] sm:$0xff]  ;;  %828 = vmatpush.msrb.mxu3 %v598_v52  ;;  %v283_v51 = vld [vmem:[#allocation2 + $0x4a8] sm:$0xff] }
  0x94   :  { %v462_v54 = vld [vmem:[#allocation2 + $0xa40] sm:$0xff]  ;;  %770 = vmatpush.msrb.mxu0 %v398_v53  ;;  %v351_v52 = vld [vmem:[#allocation2 + $0x6c8] sm:$0xff] }
  0x95   :  { %v526_v55 = vld [vmem:[#allocation2 + $0xc40] sm:$0xff]  ;;  %790 = vmatpush.msrb.mxu1 %v462_v54  ;;  %v151_v53 = vld [vmem:[#allocation2 + $0x88] sm:$0xff] }
  0x96   :  { %v594_v56 = vld [vmem:[#allocation2 + $0xe60] sm:$0xff]  ;;  %810 = vmatpush.msrb.mxu2 %v526_v55  ;;  %v215_v54 = vld [vmem:[#allocation2 + $0x288] sm:$0xff] }
  0x97   :  { %v394_v57 = vld [vmem:[#allocation2 + $0x820] sm:$0xff]  ;;  %829 = vmatpush.msrb.mxu3 %v594_v56  ;;  %v279_v55 = vld [vmem:[#allocation2 + $0x488] sm:$0xff] }
  0x98   :  { %v458_v58 = vld [vmem:[#allocation2 + $0xa20] sm:$0xff]  ;;  %771 = vmatpush.msrb.mxu0 %v394_v57  ;;  %v347_v56 = vld [vmem:[#allocation2 + $0x6a8] sm:$0xff] }
  0x99   :  { %v522_v59 = vld [vmem:[#allocation2 + $0xc20] sm:$0xff]  ;;  %791 = vmatpush.msrb.mxu1 %v458_v58  ;;  %v147_v57 = vld [vmem:[#allocation2 + $0x68] sm:$0xff] }
  0x9a   :  { %v590_v60 = vld [vmem:[#allocation2 + $0xe40] sm:$0xff]  ;;  %811 = vmatpush.msrb.mxu2 %v522_v59  ;;  %v211_v58 = vld [vmem:[#allocation2 + $0x268] sm:$0xff] }
  0x9b   :  { %v390_v61 = vld [vmem:[#allocation2 + $0x800] sm:$0xff]  ;;  %830 = vmatpush.msrb.mxu3 %v590_v60  ;;  %v275_v59 = vld [vmem:[#allocation2 + $0x468] sm:$0xff] }
  0x9c   :  { %v454_v62 = vld [vmem:[#allocation2 + $0xa00] sm:$0xff]  ;;  %772 = vmatpush.msrb.mxu0 %v390_v61  ;;  %v343_v60 = vld [vmem:[#allocation2 + $0x688] sm:$0xff] }
  0x9d   :  { %v518_v63 = vld [vmem:[#allocation2 + $0xc00] sm:$0xff]  ;;  %792 = vmatpush.msrb.mxu1 %v454_v62  ;;  %773 = vmatmul.f32.vlgmr.msrb.gmra.mxu0 %v2091_v26  ;;  %v143_v61 = vld [vmem:[#allocation2 + $0x48] sm:$0xff] }
  0x9e   :  { %v586_v0 = vld [vmem:[#allocation2 + $0xe20] sm:$0xff]  ;;  %812 = vmatpush.msrb.mxu2 %v518_v63  ;;  %837 = vmatpush.msra.mxu0 %v195_v4  ;;  %v207_v62 = vld [vmem:[#allocation2 + $0x248] sm:$0xff] }
  0x9f   :  { %v2079_v2 = vld.sshfl [vmem:[#allocation1 + $0x8] sm:$0xff pattern:$0x73625140]  ;;  %831 = vmatpush.msrb.mxu3 %v586_v0  ;;  %813 = vmatmul.f32.vlgmr.msrb.gmra.mxu2 %v2089_v21  ;;  %v271_v63 = vld [vmem:[#allocation2 + $0x448] sm:$0xff] }
  0xa0   :  { %713 = vmatmul.f32.vlgmr.msra.gmra.mxu1 %v2079_v2  ;;  %v582_v7 = vld [vmem:[#allocation2 + $0xe00] sm:$0xff]  ;;  %877 = vmatpush.msra.mxu2 %v323_v6  ;;  %v339_v0 = vld [vmem:[#allocation2 + $0x668] sm:$0xff] }
  0xa1   :  { %857 = vmatpush.msra.mxu1 %v259_v5  ;;  %832 = vmatpush.msrb.mxu3 %v582_v7  ;;  %v2097_v32 = vld.sshfl [vmem:[#allocation1 + $0x28] sm:$0xff pattern:$0x73625140]  ;;  %v139_v4 = vld [vmem:[#allocation2 + $0x28] sm:$0xff] }
  0xa2   :  { %838 = vmatpush.msra.mxu0 %v191_v8  ;;  %878 = vmatpush.msra.mxu2 %v319_v11  ;;  %v203_v5 = vld [vmem:[#allocation2 + $0x228] sm:$0xff] }
  0xa3   :  { %858 = vmatpush.msra.mxu1 %v255_v10  ;;  %897 = vmatpush.msra.mxu3 %v387_v12  ;;  %v267_v6 = vld [vmem:[#allocation2 + $0x428] sm:$0xff] }
  0xa4   :  { %839 = vmatpush.msra.mxu0 %v187_v13  ;;  %879 = vmatpush.msra.mxu2 %v315_v15  ;;  %v335_v7 = vld [vmem:[#allocation2 + $0x648] sm:$0xff] }
  0xa5   :  { %859 = vmatpush.msra.mxu1 %v251_v14  ;;  %898 = vmatpush.msra.mxu3 %v383_v16  ;;  %v135_v8 = vld [vmem:[#allocation2 + $0x8] sm:$0xff] }
  0xa6   :  { %840 = vmatpush.msra.mxu0 %v183_v17  ;;  %880 = vmatpush.msra.mxu2 %v311_v19  ;;  %v199_v10 = vld [vmem:[#allocation2 + $0x208] sm:$0xff] }
  0xa7   :  { %860 = vmatpush.msra.mxu1 %v247_v18  ;;  %899 = vmatpush.msra.mxu3 %v379_v20  ;;  %v263_v11 = vld [vmem:[#allocation2 + $0x408] sm:$0xff] }
  0xa8   :  { %841 = vmatpush.msra.mxu0 %v179_v22  ;;  %881 = vmatpush.msra.mxu2 %v307_v24  ;;  %v331_v12 = vld [vmem:[#allocation2 + $0x628] sm:$0xff] }
  0xa9   :  { %861 = vmatpush.msra.mxu1 %v243_v23  ;;  %900 = vmatpush.msra.mxu3 %v375_v25  ;;  %v451_v13 = vld [vmem:[#allocation2 + $0x9e8] sm:$0xff] }
  0xaa   :  { %833 = vmatmul.f32.vlgmr.msrb.gmra.mxu3 %v2094_v27  ;;  %842 = vmatpush.msra.mxu0 %v175_v28  ;;  %v515_v14 = vld [vmem:[#allocation2 + $0xbe8] sm:$0xff] }
  0xab   :  { %862 = vmatpush.msra.mxu1 %v239_v29  ;;  %882 = vmatpush.msra.mxu2 %v303_v30  ;;  %v579_v15 = vld [vmem:[#allocation2 + $0xde8] sm:$0xff] }
  0xac   :  { %901 = vmatpush.msra.mxu3 %v371_v31  ;;  %793 = vmatmul.f32.vlgmr.msrb.gmra.mxu1 %v2097_v32  ;;  %v327_v16 = vld [vmem:[#allocation2 + $0x608] sm:$0xff] }
  0xad   :  { %843 = vmatpush.msra.mxu0 %v171_v33  ;;  %863 = vmatpush.msra.mxu1 %v235_v34  ;;  %v447_v17 = vld [vmem:[#allocation2 + $0x9c8] sm:$0xff] }
  0xae   :  { %883 = vmatpush.msra.mxu2 %v299_v35  ;;  %902 = vmatpush.msra.mxu3 %v367_v36  ;;  %v511_v18 = vld [vmem:[#allocation2 + $0xbc8] sm:$0xff] }
  0xaf   :  { %844 = vmatpush.msra.mxu0 %v167_v37  ;;  %864 = vmatpush.msra.mxu1 %v231_v38  ;;  %v575_v19 = vld [vmem:[#allocation2 + $0xdc8] sm:$0xff] }
  0xb0   :  { %884 = vmatpush.msra.mxu2 %v295_v39  ;;  %903 = vmatpush.msra.mxu3 %v363_v40  ;;  %v643_v20 = vld [vmem:[#allocation2 + $0xfe8] sm:$0xff] }
  0xb1   :  { %845 = vmatpush.msra.mxu0 %v163_v41  ;;  %865 = vmatpush.msra.mxu1 %v227_v42  ;;  %v443_v22 = vld [vmem:[#allocation2 + $0x9a8] sm:$0xff] }
  0xb2   :  { %885 = vmatpush.msra.mxu2 %v291_v43  ;;  %904 = vmatpush.msra.mxu3 %v359_v44  ;;  %v507_v23 = vld [vmem:[#allocation2 + $0xba8] sm:$0xff] }
  0xb3   :  { %846 = vmatpush.msra.mxu0 %v159_v45  ;;  %866 = vmatpush.msra.mxu1 %v223_v46  ;;  %v571_v24 = vld [vmem:[#allocation2 + $0xda8] sm:$0xff] }
  0xb4   :  { %886 = vmatpush.msra.mxu2 %v287_v47  ;;  %905 = vmatpush.msra.mxu3 %v355_v48  ;;  %v639_v25 = vld [vmem:[#allocation2 + $0xfc8] sm:$0xff] }
  0xb5   :  { %847 = vmatpush.msra.mxu0 %v155_v49  ;;  %867 = vmatpush.msra.mxu1 %v219_v50  ;;  %v439_v28 = vld [vmem:[#allocation2 + $0x988] sm:$0xff] }
  0xb6   :  { %887 = vmatpush.msra.mxu2 %v283_v51  ;;  %906 = vmatpush.msra.mxu3 %v351_v52  ;;  %v503_v29 = vld [vmem:[#allocation2 + $0xb88] sm:$0xff] }
  0xb7   :  { %848 = vmatpush.msra.mxu0 %v151_v53  ;;  %868 = vmatpush.msra.mxu1 %v215_v54  ;;  %v567_v30 = vld [vmem:[#allocation2 + $0xd88] sm:$0xff] }
  0xb8   :  { %888 = vmatpush.msra.mxu2 %v279_v55  ;;  %907 = vmatpush.msra.mxu3 %v347_v56  ;;  %v635_v31 = vld [vmem:[#allocation2 + $0xfa8] sm:$0xff] }
  0xb9   :  { %849 = vmatpush.msra.mxu0 %v147_v57  ;;  %869 = vmatpush.msra.mxu1 %v211_v58  ;;  %v435_v33 = vld [vmem:[#allocation2 + $0x968] sm:$0xff] }
  0xba   :  { %889 = vmatpush.msra.mxu2 %v275_v59  ;;  %908 = vmatpush.msra.mxu3 %v343_v60  ;;  %v499_v34 = vld [vmem:[#allocation2 + $0xb68] sm:$0xff] }
  0xbb   :  { %850 = vmatpush.msra.mxu0 %v143_v61  ;;  %870 = vmatpush.msra.mxu1 %v207_v62  ;;  %v563_v35 = vld [vmem:[#allocation2 + $0xd68] sm:$0xff] }
  0xbc   :  { %890 = vmatpush.msra.mxu2 %v271_v63  ;;  %909 = vmatpush.msra.mxu3 %v339_v0  ;;  %v631_v36 = vld [vmem:[#allocation2 + $0xf88] sm:$0xff] }
  0xbd   :  { %851 = vmatpush.msra.mxu0 %v139_v4  ;;  %871 = vmatpush.msra.mxu1 %v203_v5  ;;  %v431_v37 = vld [vmem:[#allocation2 + $0x948] sm:$0xff] }
  0xbe   :  { %891 = vmatpush.msra.mxu2 %v267_v6  ;;  %910 = vmatpush.msra.mxu3 %v335_v7  ;;  %v495_v38 = vld [vmem:[#allocation2 + $0xb48] sm:$0xff] }
  0xbf   :  { %852 = vmatpush.msra.mxu0 %v135_v8  ;;  %872 = vmatpush.msra.mxu1 %v199_v10  ;;  %v559_v39 = vld [vmem:[#allocation2 + $0xd48] sm:$0xff] }
  0xc0   :  { %892 = vmatpush.msra.mxu2 %v263_v11  ;;  %911 = vmatpush.msra.mxu3 %v331_v12  ;;  %v627_v40 = vld [vmem:[#allocation2 + $0xf68] sm:$0xff] }
  0xc1   :  { %917 = vmatpush.msrb.mxu0 %v451_v13  ;;  %937 = vmatpush.msrb.mxu1 %v515_v14  ;;  %v427_v41 = vld [vmem:[#allocation2 + $0x928] sm:$0xff] }
  0xc2   :  { %957 = vmatpush.msrb.mxu2 %v579_v15  ;;  %912 = vmatpush.msra.mxu3 %v327_v16  ;;  %v491_v42 = vld [vmem:[#allocation2 + $0xb28] sm:$0xff] }
  0xc3   :  { %918 = vmatpush.msrb.mxu0 %v447_v17  ;;  %938 = vmatpush.msrb.mxu1 %v511_v18  ;;  %v555_v43 = vld [vmem:[#allocation2 + $0xd28] sm:$0xff] }
  0xc4   :  { %958 = vmatpush.msrb.mxu2 %v575_v19  ;;  %977 = vmatpush.msrb.mxu3 %v643_v20  ;;  %v623_v44 = vld [vmem:[#allocation2 + $0xf48] sm:$0xff] }
  0xc5   :  { %919 = vmatpush.msrb.mxu0 %v443_v22  ;;  %939 = vmatpush.msrb.mxu1 %v507_v23  ;;  %v423_v45 = vld [vmem:[#allocation2 + $0x908] sm:$0xff]  ;;  %v196_v22 = vld [vmem:[#allocation2 + $0x1f0] sm:$0xff] }
  0xc6   :  { %959 = vmatpush.msrb.mxu2 %v571_v24  ;;  %978 = vmatpush.msrb.mxu3 %v639_v25  ;;  %v487_v46 = vld [vmem:[#allocation2 + $0xb08] sm:$0xff]  ;;  %v260_v23 = vld [vmem:[#allocation2 + $0x3f0] sm:$0xff] }
  0xc7   :  { %920 = vmatpush.msrb.mxu0 %v439_v28  ;;  %940 = vmatpush.msrb.mxu1 %v503_v29  ;;  %v551_v47 = vld [vmem:[#allocation2 + $0xd08] sm:$0xff]  ;;  %v324_v24 = vld [vmem:[#allocation2 + $0x5f0] sm:$0xff] }
  0xc8   :  { %960 = vmatpush.msrb.mxu2 %v567_v30  ;;  %979 = vmatpush.msrb.mxu3 %v635_v31  ;;  %v619_v48 = vld [vmem:[#allocation2 + $0xf28] sm:$0xff]  ;;  %v192_v28 = vld [vmem:[#allocation2 + $0x1d0] sm:$0xff] }
  0xc9   :  { %921 = vmatpush.msrb.mxu0 %v435_v33  ;;  %941 = vmatpush.msrb.mxu1 %v499_v34  ;;  %v419_v49 = vld [vmem:[#allocation2 + $0x8e8] sm:$0xff]  ;;  %v256_v29 = vld [vmem:[#allocation2 + $0x3d0] sm:$0xff] }
  0xca   :  { %961 = vmatpush.msrb.mxu2 %v563_v35  ;;  %980 = vmatpush.msrb.mxu3 %v631_v36  ;;  %v483_v50 = vld [vmem:[#allocation2 + $0xae8] sm:$0xff]  ;;  %v320_v30 = vld [vmem:[#allocation2 + $0x5d0] sm:$0xff] }
  0xcb   :  { %922 = vmatpush.msrb.mxu0 %v431_v37  ;;  %942 = vmatpush.msrb.mxu1 %v495_v38  ;;  %v547_v51 = vld [vmem:[#allocation2 + $0xce8] sm:$0xff]  ;;  %v388_v31 = vld [vmem:[#allocation2 + $0x7f0] sm:$0xff] }
  0xcc   :  { %962 = vmatpush.msrb.mxu2 %v559_v39  ;;  %981 = vmatpush.msrb.mxu3 %v627_v40  ;;  %v615_v52 = vld [vmem:[#allocation2 + $0xf08] sm:$0xff]  ;;  %v188_v33 = vld [vmem:[#allocation2 + $0x1b0] sm:$0xff] }
  0xcd   :  { %923 = vmatpush.msrb.mxu0 %v427_v41  ;;  %943 = vmatpush.msrb.mxu1 %v491_v42  ;;  %v415_v53 = vld [vmem:[#allocation2 + $0x8c8] sm:$0xff]  ;;  %v252_v34 = vld [vmem:[#allocation2 + $0x3b0] sm:$0xff] }
  0xce   :  { %963 = vmatpush.msrb.mxu2 %v555_v43  ;;  %982 = vmatpush.msrb.mxu3 %v623_v44  ;;  %v479_v54 = vld [vmem:[#allocation2 + $0xac8] sm:$0xff]  ;;  %v384_v35 = vld [vmem:[#allocation2 + $0x7d0] sm:$0xff] }
  0xcf   :  { %924 = vmatpush.msrb.mxu0 %v423_v45  ;;  %944 = vmatpush.msrb.mxu1 %v487_v46  ;;  %v543_v55 = vld [vmem:[#allocation2 + $0xcc8] sm:$0xff]  ;;  %v248_v36 = vld [vmem:[#allocation2 + $0x390] sm:$0xff] }
  0xd0   :  { %964 = vmatpush.msrb.mxu2 %v551_v47  ;;  %983 = vmatpush.msrb.mxu3 %v619_v48  ;;  %v611_v56 = vld [vmem:[#allocation2 + $0xee8] sm:$0xff]  ;;  %v312_v37 = vld [vmem:[#allocation2 + $0x590] sm:$0xff] }
  0xd1   :  { %925 = vmatpush.msrb.mxu0 %v419_v49  ;;  %945 = vmatpush.msrb.mxu1 %v483_v50  ;;  %v411_v57 = vld [vmem:[#allocation2 + $0x8a8] sm:$0xff]  ;;  %v380_v38 = vld [vmem:[#allocation2 + $0x7b0] sm:$0xff] }
  0xd2   :  { %965 = vmatpush.msrb.mxu2 %v547_v51  ;;  %984 = vmatpush.msrb.mxu3 %v615_v52  ;;  %v475_v58 = vld [vmem:[#allocation2 + $0xaa8] sm:$0xff]  ;;  %v180_v39 = vld [vmem:[#allocation2 + $0x170] sm:$0xff] }
  0xd3   :  { %926 = vmatpush.msrb.mxu0 %v415_v53  ;;  %946 = vmatpush.msrb.mxu1 %v479_v54  ;;  %v539_v59 = vld [vmem:[#allocation2 + $0xca8] sm:$0xff]  ;;  %v244_v40 = vld [vmem:[#allocation2 + $0x370] sm:$0xff] }
  0xd4   :  { %v607_v60 = vld [vmem:[#allocation2 + $0xec8] sm:$0xff]  ;;  %966 = vmatpush.msrb.mxu2 %v543_v55  ;;  %985 = vmatpush.msrb.mxu3 %v611_v56  ;;  %v308_v41 = vld [vmem:[#allocation2 + $0x570] sm:$0xff] }
  0xd5   :  { %v407_v61 = vld [vmem:[#allocation2 + $0x888] sm:$0xff]  ;;  %927 = vmatpush.msrb.mxu0 %v411_v57  ;;  %947 = vmatpush.msrb.mxu1 %v475_v58  ;;  %v376_v42 = vld [vmem:[#allocation2 + $0x790] sm:$0xff] }
  0xd6   :  { %v471_v62 = vld [vmem:[#allocation2 + $0xa88] sm:$0xff]  ;;  %967 = vmatpush.msrb.mxu2 %v539_v59  ;;  %986 = vmatpush.msrb.mxu3 %v607_v60  ;;  %v176_v43 = vld [vmem:[#allocation2 + $0x150] sm:$0xff] }
  0xd7   :  { %v535_v63 = vld [vmem:[#allocation2 + $0xc88] sm:$0xff]  ;;  %928 = vmatpush.msrb.mxu0 %v407_v61  ;;  %948 = vmatpush.msrb.mxu1 %v471_v62  ;;  %v240_v44 = vld [vmem:[#allocation2 + $0x350] sm:$0xff] }
  0xd8   :  { %v603_v0 = vld [vmem:[#allocation2 + $0xea8] sm:$0xff]  ;;  %968 = vmatpush.msrb.mxu2 %v535_v63  ;;  %853 = vmatmul.f32.vlgmr.msra.gmra.mxu0 %v2077_v1  ;;  %v316_v1 = vld [vmem:[#allocation2 + $0x5b0] sm:$0xff] }
  0xd9   :  { %v403_v4 = vld [vmem:[#allocation2 + $0x868] sm:$0xff]  ;;  %987 = vmatpush.msrb.mxu3 %v603_v0  ;;  %873 = vmatmul.f32.vlgmr.msra.gmra.mxu1 %v2079_v2  ;;  %v184_v2 = vld [vmem:[#allocation2 + $0x190] sm:$0xff] }
  0xda   :  { %v467_v5 = vld [vmem:[#allocation2 + $0xa68] sm:$0xff]  ;;  %929 = vmatpush.msrb.mxu0 %v403_v4  ;;  %893 = vmatmul.f32.vlgmr.msra.gmra.mxu2 %v2081_v3  ;;  %v304_v45 = vld [vmem:[#allocation2 + $0x550] sm:$0xff] }
  0xdb   :  { %v531_v6 = vld [vmem:[#allocation2 + $0xc68] sm:$0xff]  ;;  %949 = vmatpush.msrb.mxu1 %v467_v5  ;;  %913 = vmatmul.f32.vlgmr.msra.gmra.mxu3 %v2086_v9  ;;  %v372_v46 = vld [vmem:[#allocation2 + $0x770] sm:$0xff] }
  0xdc   :  { %v599_v7 = vld [vmem:[#allocation2 + $0xe88] sm:$0xff]  ;;  %969 = vmatpush.msrb.mxu2 %v531_v6  ;;  %v172_v47 = vld [vmem:[#allocation2 + $0x130] sm:$0xff] }
  0xdd   :  { %v399_v8 = vld [vmem:[#allocation2 + $0x848] sm:$0xff]  ;;  %988 = vmatpush.msrb.mxu3 %v599_v7  ;;  %v236_v48 = vld [vmem:[#allocation2 + $0x330] sm:$0xff] }
  0xde   :  { %v463_v10 = vld [vmem:[#allocation2 + $0xa48] sm:$0xff]  ;;  %930 = vmatpush.msrb.mxu0 %v399_v8  ;;  %v300_v49 = vld [vmem:[#allocation2 + $0x530] sm:$0xff] }
  0xdf   :  { %v527_v11 = vld [vmem:[#allocation2 + $0xc48] sm:$0xff]  ;;  %950 = vmatpush.msrb.mxu1 %v463_v10  ;;  %v368_v50 = vld [vmem:[#allocation2 + $0x750] sm:$0xff] }
  0xe0   :  { %v595_v12 = vld [vmem:[#allocation2 + $0xe68] sm:$0xff]  ;;  %970 = vmatpush.msrb.mxu2 %v527_v11  ;;  %v168_v51 = vld [vmem:[#allocation2 + $0x110] sm:$0xff] }
  0xe1   :  { %v395_v13 = vld [vmem:[#allocation2 + $0x828] sm:$0xff]  ;;  %989 = vmatpush.msrb.mxu3 %v595_v12  ;;  %v232_v52 = vld [vmem:[#allocation2 + $0x310] sm:$0xff] }
  0xe2   :  { %v459_v14 = vld [vmem:[#allocation2 + $0xa28] sm:$0xff]  ;;  %931 = vmatpush.msrb.mxu0 %v395_v13  ;;  %v296_v53 = vld [vmem:[#allocation2 + $0x510] sm:$0xff] }
  0xe3   :  { %v523_v15 = vld [vmem:[#allocation2 + $0xc28] sm:$0xff]  ;;  %951 = vmatpush.msrb.mxu1 %v459_v14  ;;  %v364_v54 = vld [vmem:[#allocation2 + $0x730] sm:$0xff] }
  0xe4   :  { %v591_v16 = vld [vmem:[#allocation2 + $0xe48] sm:$0xff]  ;;  %971 = vmatpush.msrb.mxu2 %v523_v15  ;;  %v164_v55 = vld [vmem:[#allocation2 + $0xf0] sm:$0xff] }
  0xe5   :  { %v391_v17 = vld [vmem:[#allocation2 + $0x808] sm:$0xff]  ;;  %990 = vmatpush.msrb.mxu3 %v591_v16  ;;  %v228_v56 = vld [vmem:[#allocation2 + $0x2f0] sm:$0xff] }
  0xe6   :  { %v455_v18 = vld [vmem:[#allocation2 + $0xa08] sm:$0xff]  ;;  %932 = vmatpush.msrb.mxu0 %v391_v17  ;;  %v292_v57 = vld [vmem:[#allocation2 + $0x4f0] sm:$0xff] }
  0xe7   :  { %v519_v19 = vld [vmem:[#allocation2 + $0xc08] sm:$0xff]  ;;  %952 = vmatpush.msrb.mxu1 %v455_v18  ;;  %933 = vmatmul.f32.vlgmr.msrb.gmra.mxu0 %v2091_v26  ;;  %v360_v58 = vld [vmem:[#allocation2 + $0x710] sm:$0xff] }
  0xe8   :  { %v587_v20 = vld [vmem:[#allocation2 + $0xe28] sm:$0xff]  ;;  %972 = vmatpush.msrb.mxu2 %v519_v19  ;;  %997 = vmatpush.msra.mxu0 %v196_v22  ;;  %v160_v59 = vld [vmem:[#allocation2 + $0xd0] sm:$0xff] }
  0xe9   :  { %991 = vmatpush.msrb.mxu3 %v587_v20  ;;  %v583_v25 = vld [vmem:[#allocation2 + $0xe08] sm:$0xff]  ;;  %1017 = vmatpush.msra.mxu1 %v260_v23  ;;  %v224_v60 = vld [vmem:[#allocation2 + $0x2d0] sm:$0xff] }
  0xea   :  { %1037 = vmatpush.msra.mxu2 %v324_v24  ;;  %998 = vmatpush.msra.mxu0 %v192_v28  ;;  %v288_v61 = vld [vmem:[#allocation2 + $0x4d0] sm:$0xff] }
  0xeb   :  { %992 = vmatpush.msrb.mxu3 %v583_v25  ;;  %1018 = vmatpush.msra.mxu1 %v256_v29  ;;  %v356_v62 = vld [vmem:[#allocation2 + $0x6f0] sm:$0xff] }
  0xec   :  { %1038 = vmatpush.msra.mxu2 %v320_v30  ;;  %999 = vmatpush.msra.mxu0 %v188_v33  ;;  %v156_v63 = vld [vmem:[#allocation2 + $0xb0] sm:$0xff] }
  0xed   :  { %1057 = vmatpush.msra.mxu3 %v388_v31  ;;  %1019 = vmatpush.msra.mxu1 %v252_v34  ;;  %v220_v0 = vld [vmem:[#allocation2 + $0x2b0] sm:$0xff] }
  0xee   :  { %1039 = vmatpush.msra.mxu2 %v316_v1  ;;  %1000 = vmatpush.msra.mxu0 %v184_v2  ;;  %v284_v4 = vld [vmem:[#allocation2 + $0x4b0] sm:$0xff] }
  0xef   :  { %1058 = vmatpush.msra.mxu3 %v384_v35  ;;  %1020 = vmatpush.msra.mxu1 %v248_v36  ;;  %v352_v5 = vld [vmem:[#allocation2 + $0x6d0] sm:$0xff] }
  0xf0   :  { %1040 = vmatpush.msra.mxu2 %v312_v37  ;;  %1001 = vmatpush.msra.mxu0 %v180_v39  ;;  %v152_v6 = vld [vmem:[#allocation2 + $0x90] sm:$0xff] }
  0xf1   :  { %1059 = vmatpush.msra.mxu3 %v380_v38  ;;  %973 = vmatmul.f32.vlgmr.msrb.gmra.mxu2 %v2089_v21  ;;  %v216_v7 = vld [vmem:[#allocation2 + $0x290] sm:$0xff] }
  0xf2   :  { %1021 = vmatpush.msra.mxu1 %v244_v40  ;;  %1041 = vmatpush.msra.mxu2 %v308_v41  ;;  %v280_v8 = vld [vmem:[#allocation2 + $0x490] sm:$0xff] }
  0xf3   :  { %1060 = vmatpush.msra.mxu3 %v376_v42  ;;  %1002 = vmatpush.msra.mxu0 %v176_v43  ;;  %v348_v10 = vld [vmem:[#allocation2 + $0x6b0] sm:$0xff] }
  0xf4   :  { %993 = vmatmul.f32.vlgmr.msrb.gmra.mxu3 %v2094_v27  ;;  %1022 = vmatpush.msra.mxu1 %v240_v44  ;;  %v148_v11 = vld [vmem:[#allocation2 + $0x70] sm:$0xff] }
  0xf5   :  { %1042 = vmatpush.msra.mxu2 %v304_v45  ;;  %1061 = vmatpush.msra.mxu3 %v372_v46  ;;  %v212_v12 = vld [vmem:[#allocation2 + $0x270] sm:$0xff] }
  0xf6   :  { %953 = vmatmul.f32.vlgmr.msrb.gmra.mxu1 %v2097_v32  ;;  %1003 = vmatpush.msra.mxu0 %v172_v47  ;;  %v276_v13 = vld [vmem:[#allocation2 + $0x470] sm:$0xff] }
  0xf7   :  { %1023 = vmatpush.msra.mxu1 %v236_v48  ;;  %1043 = vmatpush.msra.mxu2 %v300_v49  ;;  %v344_v14 = vld [vmem:[#allocation2 + $0x690] sm:$0xff] }
  0xf8   :  { %1062 = vmatpush.msra.mxu3 %v368_v50  ;;  %1004 = vmatpush.msra.mxu0 %v168_v51  ;;  %v144_v15 = vld [vmem:[#allocation2 + $0x50] sm:$0xff] }
  0xf9   :  { %1024 = vmatpush.msra.mxu1 %v232_v52  ;;  %1044 = vmatpush.msra.mxu2 %v296_v53  ;;  %v208_v16 = vld [vmem:[#allocation2 + $0x250] sm:$0xff] }
  0xfa   :  { %1063 = vmatpush.msra.mxu3 %v364_v54  ;;  %1005 = vmatpush.msra.mxu0 %v164_v55  ;;  %v272_v17 = vld [vmem:[#allocation2 + $0x450] sm:$0xff] }
  0xfb   :  { %1025 = vmatpush.msra.mxu1 %v228_v56  ;;  %1045 = vmatpush.msra.mxu2 %v292_v57  ;;  %v340_v18 = vld [vmem:[#allocation2 + $0x670] sm:$0xff] }
  0xfc   :  { %1064 = vmatpush.msra.mxu3 %v360_v58  ;;  %1006 = vmatpush.msra.mxu0 %v160_v59  ;;  %v140_v19 = vld [vmem:[#allocation2 + $0x30] sm:$0xff] }
  0xfd   :  { %1026 = vmatpush.msra.mxu1 %v224_v60  ;;  %1046 = vmatpush.msra.mxu2 %v288_v61  ;;  %v204_v20 = vld [vmem:[#allocation2 + $0x230] sm:$0xff] }
  0xfe   :  { %1065 = vmatpush.msra.mxu3 %v356_v62  ;;  %1007 = vmatpush.msra.mxu0 %v156_v63  ;;  %v268_v22 = vld [vmem:[#allocation2 + $0x430] sm:$0xff] }
  0xff   :  { %1027 = vmatpush.msra.mxu1 %v220_v0  ;;  %1047 = vmatpush.msra.mxu2 %v284_v4  ;;  %v336_v23 = vld [vmem:[#allocation2 + $0x650] sm:$0xff] }
 0x100   :  { %1066 = vmatpush.msra.mxu3 %v352_v5  ;;  %1008 = vmatpush.msra.mxu0 %v152_v6  ;;  %v136_v24 = vld [vmem:[#allocation2 + $0x10] sm:$0xff] }
 0x101   :  { %1028 = vmatpush.msra.mxu1 %v216_v7  ;;  %1048 = vmatpush.msra.mxu2 %v280_v8  ;;  %v200_v25 = vld [vmem:[#allocation2 + $0x210] sm:$0xff] }
 0x102   :  { %1067 = vmatpush.msra.mxu3 %v348_v10  ;;  %1009 = vmatpush.msra.mxu0 %v148_v11  ;;  %v264_v28 = vld [vmem:[#allocation2 + $0x410] sm:$0xff] }
 0x103   :  { %1029 = vmatpush.msra.mxu1 %v212_v12  ;;  %1049 = vmatpush.msra.mxu2 %v276_v13  ;;  %v332_v29 = vld [vmem:[#allocation2 + $0x630] sm:$0xff] }
 0x104   :  { %1068 = vmatpush.msra.mxu3 %v344_v14  ;;  %1010 = vmatpush.msra.mxu0 %v144_v15  ;;  %v452_v30 = vld [vmem:[#allocation2 + $0x9f0] sm:$0xff] }
 0x105   :  { %1030 = vmatpush.msra.mxu1 %v208_v16  ;;  %1050 = vmatpush.msra.mxu2 %v272_v17  ;;  %v516_v31 = vld [vmem:[#allocation2 + $0xbf0] sm:$0xff] }
 0x106   :  { %1069 = vmatpush.msra.mxu3 %v340_v18  ;;  %1011 = vmatpush.msra.mxu0 %v140_v19  ;;  %v580_v33 = vld [vmem:[#allocation2 + $0xdf0] sm:$0xff] }
 0x107   :  { %1031 = vmatpush.msra.mxu1 %v204_v20  ;;  %1051 = vmatpush.msra.mxu2 %v268_v22  ;;  %v328_v34 = vld [vmem:[#allocation2 + $0x610] sm:$0xff] }
 0x108   :  { %1070 = vmatpush.msra.mxu3 %v336_v23  ;;  %1012 = vmatpush.msra.mxu0 %v136_v24  ;;  %v448_v1 = vld [vmem:[#allocation2 + $0x9d0] sm:$0xff] }
 0x109   :  { %1032 = vmatpush.msra.mxu1 %v200_v25  ;;  %1052 = vmatpush.msra.mxu2 %v264_v28  ;;  %v512_v35 = vld [vmem:[#allocation2 + $0xbd0] sm:$0xff]  ;;  %v2110_v25 = vld.sshfl [vmem:[#allocation1] sm:$0xff pattern:$0x73625140] }
 0x10a   :  { %1071 = vmatpush.msra.mxu3 %v332_v29  ;;  %1077 = vmatpush.msrb.mxu0 %v452_v30  ;;  %v576_v2 = vld [vmem:[#allocation2 + $0xdd0] sm:$0xff] }
 0x10b   :  { %1097 = vmatpush.msrb.mxu1 %v516_v31  ;;  %v644_v36 = vld [vmem:[#allocation2 + $0xff0] sm:$0xff]  ;;  %1117 = vmatpush.msrb.mxu2 %v580_v33  ;;  %v2114_v33 = vld.sshfl [vmem:[#allocation1 + $0x8] sm:$0xff pattern:$0x73625140] }
 0x10c   :  { %1072 = vmatpush.msra.mxu3 %v328_v34  ;;  %v444_v37 = vld [vmem:[#allocation2 + $0x9b0] sm:$0xff]  ;;  %1078 = vmatpush.msrb.mxu0 %v448_v1 }
 0x10d   :  { %v508_v38 = vld [vmem:[#allocation2 + $0xbb0] sm:$0xff]  ;;  %1098 = vmatpush.msrb.mxu1 %v512_v35  ;;  %1118 = vmatpush.msrb.mxu2 %v576_v2 }
 0x10e   :  { %v572_v39 = vld [vmem:[#allocation2 + $0xdb0] sm:$0xff]  ;;  %1137 = vmatpush.msrb.mxu3 %v644_v36  ;;  %1079 = vmatpush.msrb.mxu0 %v444_v37  ;;  %v261_v36 = vld [vmem:[#allocation2 + $0x3f8] sm:$0xff] }
 0x10f   :  { %v640_v40 = vld [vmem:[#allocation2 + $0xfd0] sm:$0xff]  ;;  %1099 = vmatpush.msrb.mxu1 %v508_v38  ;;  %1119 = vmatpush.msrb.mxu2 %v572_v39  ;;  %v325_v37 = vld [vmem:[#allocation2 + $0x5f8] sm:$0xff] }
 0x110   :  { %v440_v41 = vld [vmem:[#allocation2 + $0x990] sm:$0xff]  ;;  %1138 = vmatpush.msrb.mxu3 %v640_v40  ;;  %1053 = vmatmul.f32.vlgmr.msra.gmra.mxu2 %v2081_v3  ;;  %v193_v39 = vld [vmem:[#allocation2 + $0x1d8] sm:$0xff] }
 0x111   :  { %v504_v42 = vld [vmem:[#allocation2 + $0xb90] sm:$0xff]  ;;  %1080 = vmatpush.msrb.mxu0 %v440_v41  ;;  %1073 = vmatmul.f32.vlgmr.msra.gmra.mxu3 %v2086_v9  ;;  %v197_v9 = vld [vmem:[#allocation2 + $0x1f8] sm:$0xff] }
 0x112   :  { %v568_v43 = vld [vmem:[#allocation2 + $0xd90] sm:$0xff]  ;;  %1100 = vmatpush.msrb.mxu1 %v504_v42  ;;  %1013 = vmatmul.f32.vlgmr.msra.gmra.mxu0 %v2110_v25  ;;  %v257_v40 = vld [vmem:[#allocation2 + $0x3d8] sm:$0xff] }
 0x113   :  { %v636_v44 = vld [vmem:[#allocation2 + $0xfb0] sm:$0xff]  ;;  %1120 = vmatpush.msrb.mxu2 %v568_v43  ;;  %1033 = vmatmul.f32.vlgmr.msra.gmra.mxu1 %v2114_v33  ;;  %v321_v41 = vld [vmem:[#allocation2 + $0x5d8] sm:$0xff] }
 0x114   :  { %v436_v45 = vld [vmem:[#allocation2 + $0x970] sm:$0xff]  ;;  %1139 = vmatpush.msrb.mxu3 %v636_v44  ;;  %v389_v42 = vld [vmem:[#allocation2 + $0x7f8] sm:$0xff] }
 0x115   :  { %v500_v46 = vld [vmem:[#allocation2 + $0xb70] sm:$0xff]  ;;  %1081 = vmatpush.msrb.mxu0 %v436_v45  ;;  %v189_v43 = vld [vmem:[#allocation2 + $0x1b8] sm:$0xff] }
 0x116   :  { %v564_v47 = vld [vmem:[#allocation2 + $0xd70] sm:$0xff]  ;;  %1101 = vmatpush.msrb.mxu1 %v500_v46  ;;  %v253_v44 = vld [vmem:[#allocation2 + $0x3b8] sm:$0xff] }
 0x117   :  { %v632_v48 = vld [vmem:[#allocation2 + $0xf90] sm:$0xff]  ;;  %1121 = vmatpush.msrb.mxu2 %v564_v47  ;;  %v317_v45 = vld [vmem:[#allocation2 + $0x5b8] sm:$0xff] }
 0x118   :  { %v432_v49 = vld [vmem:[#allocation2 + $0x950] sm:$0xff]  ;;  %1140 = vmatpush.msrb.mxu3 %v632_v48  ;;  %v385_v46 = vld [vmem:[#allocation2 + $0x7d8] sm:$0xff] }
 0x119   :  { %v496_v50 = vld [vmem:[#allocation2 + $0xb50] sm:$0xff]  ;;  %1082 = vmatpush.msrb.mxu0 %v432_v49  ;;  %v249_v47 = vld [vmem:[#allocation2 + $0x398] sm:$0xff] }
 0x11a   :  { %v560_v51 = vld [vmem:[#allocation2 + $0xd50] sm:$0xff]  ;;  %1102 = vmatpush.msrb.mxu1 %v496_v50  ;;  %v313_v48 = vld [vmem:[#allocation2 + $0x598] sm:$0xff] }
 0x11b   :  { %v628_v52 = vld [vmem:[#allocation2 + $0xf70] sm:$0xff]  ;;  %1122 = vmatpush.msrb.mxu2 %v560_v51  ;;  %v381_v49 = vld [vmem:[#allocation2 + $0x7b8] sm:$0xff] }
 0x11c   :  { %v428_v53 = vld [vmem:[#allocation2 + $0x930] sm:$0xff]  ;;  %1141 = vmatpush.msrb.mxu3 %v628_v52  ;;  %v309_v50 = vld [vmem:[#allocation2 + $0x578] sm:$0xff] }
 0x11d   :  { %v492_v54 = vld [vmem:[#allocation2 + $0xb30] sm:$0xff]  ;;  %1083 = vmatpush.msrb.mxu0 %v428_v53  ;;  %v377_v51 = vld [vmem:[#allocation2 + $0x798] sm:$0xff] }
 0x11e   :  { %v556_v55 = vld [vmem:[#allocation2 + $0xd30] sm:$0xff]  ;;  %1103 = vmatpush.msrb.mxu1 %v492_v54  ;;  %v177_v52 = vld [vmem:[#allocation2 + $0x158] sm:$0xff] }
 0x11f   :  { %v624_v56 = vld [vmem:[#allocation2 + $0xf50] sm:$0xff]  ;;  %1123 = vmatpush.msrb.mxu2 %v556_v55  ;;  %v241_v53 = vld [vmem:[#allocation2 + $0x358] sm:$0xff] }
 0x120   :  { %v424_v57 = vld [vmem:[#allocation2 + $0x910] sm:$0xff]  ;;  %1142 = vmatpush.msrb.mxu3 %v624_v56  ;;  %v373_v54 = vld [vmem:[#allocation2 + $0x778] sm:$0xff] }
 0x121   :  { %v488_v58 = vld [vmem:[#allocation2 + $0xb10] sm:$0xff]  ;;  %1084 = vmatpush.msrb.mxu0 %v424_v57  ;;  %v173_v55 = vld [vmem:[#allocation2 + $0x138] sm:$0xff] }
 0x122   :  { %v552_v59 = vld [vmem:[#allocation2 + $0xd10] sm:$0xff]  ;;  %1104 = vmatpush.msrb.mxu1 %v488_v58  ;;  %v237_v56 = vld [vmem:[#allocation2 + $0x338] sm:$0xff] }
 0x123   :  { %v620_v60 = vld [vmem:[#allocation2 + $0xf30] sm:$0xff]  ;;  %1124 = vmatpush.msrb.mxu2 %v552_v59  ;;  %v301_v57 = vld [vmem:[#allocation2 + $0x538] sm:$0xff] }
 0x124   :  { %v420_v61 = vld [vmem:[#allocation2 + $0x8f0] sm:$0xff]  ;;  %1143 = vmatpush.msrb.mxu3 %v620_v60  ;;  %v369_v58 = vld [vmem:[#allocation2 + $0x758] sm:$0xff] }
 0x125   :  { %v484_v62 = vld [vmem:[#allocation2 + $0xaf0] sm:$0xff]  ;;  %1085 = vmatpush.msrb.mxu0 %v420_v61  ;;  %v169_v59 = vld [vmem:[#allocation2 + $0x118] sm:$0xff] }
 0x126   :  { %v548_v63 = vld [vmem:[#allocation2 + $0xcf0] sm:$0xff]  ;;  %1105 = vmatpush.msrb.mxu1 %v484_v62  ;;  %v233_v60 = vld [vmem:[#allocation2 + $0x318] sm:$0xff] }
 0x127   :  { %v616_v0 = vld [vmem:[#allocation2 + $0xf10] sm:$0xff]  ;;  %1125 = vmatpush.msrb.mxu2 %v548_v63  ;;  %v297_v61 = vld [vmem:[#allocation2 + $0x518] sm:$0xff] }
 0x128   :  { %v416_v4 = vld [vmem:[#allocation2 + $0x8d0] sm:$0xff]  ;;  %1144 = vmatpush.msrb.mxu3 %v616_v0  ;;  %v365_v62 = vld [vmem:[#allocation2 + $0x738] sm:$0xff] }
 0x129   :  { %v480_v5 = vld [vmem:[#allocation2 + $0xad0] sm:$0xff]  ;;  %1086 = vmatpush.msrb.mxu0 %v416_v4  ;;  %v165_v63 = vld [vmem:[#allocation2 + $0xf8] sm:$0xff] }
 0x12a   :  { %v544_v6 = vld [vmem:[#allocation2 + $0xcd0] sm:$0xff]  ;;  %1106 = vmatpush.msrb.mxu1 %v480_v5  ;;  %v229_v0 = vld [vmem:[#allocation2 + $0x2f8] sm:$0xff] }
 0x12b   :  { %v612_v7 = vld [vmem:[#allocation2 + $0xef0] sm:$0xff]  ;;  %1126 = vmatpush.msrb.mxu2 %v544_v6  ;;  %v293_v4 = vld [vmem:[#allocation2 + $0x4f8] sm:$0xff] }
 0x12c   :  { %v412_v8 = vld [vmem:[#allocation2 + $0x8b0] sm:$0xff]  ;;  %1145 = vmatpush.msrb.mxu3 %v612_v7  ;;  %v361_v5 = vld [vmem:[#allocation2 + $0x718] sm:$0xff] }
 0x12d   :  { %v476_v10 = vld [vmem:[#allocation2 + $0xab0] sm:$0xff]  ;;  %1087 = vmatpush.msrb.mxu0 %v412_v8  ;;  %v161_v6 = vld [vmem:[#allocation2 + $0xd8] sm:$0xff] }
 0x12e   :  { %v540_v11 = vld [vmem:[#allocation2 + $0xcb0] sm:$0xff]  ;;  %1107 = vmatpush.msrb.mxu1 %v476_v10  ;;  %v225_v7 = vld [vmem:[#allocation2 + $0x2d8] sm:$0xff] }
 0x12f   :  { %v608_v12 = vld [vmem:[#allocation2 + $0xed0] sm:$0xff]  ;;  %1127 = vmatpush.msrb.mxu2 %v540_v11  ;;  %v289_v8 = vld [vmem:[#allocation2 + $0x4d8] sm:$0xff] }
 0x130   :  { %v408_v13 = vld [vmem:[#allocation2 + $0x890] sm:$0xff]  ;;  %1146 = vmatpush.msrb.mxu3 %v608_v12  ;;  %v357_v10 = vld [vmem:[#allocation2 + $0x6f8] sm:$0xff] }
 0x131   :  { %v472_v14 = vld [vmem:[#allocation2 + $0xa90] sm:$0xff]  ;;  %1088 = vmatpush.msrb.mxu0 %v408_v13  ;;  %v157_v11 = vld [vmem:[#allocation2 + $0xb8] sm:$0xff] }
 0x132   :  { %v536_v15 = vld [vmem:[#allocation2 + $0xc90] sm:$0xff]  ;;  %1108 = vmatpush.msrb.mxu1 %v472_v14  ;;  %v221_v12 = vld [vmem:[#allocation2 + $0x2b8] sm:$0xff] }
 0x133   :  { %v604_v16 = vld [vmem:[#allocation2 + $0xeb0] sm:$0xff]  ;;  %1128 = vmatpush.msrb.mxu2 %v536_v15  ;;  %v285_v13 = vld [vmem:[#allocation2 + $0x4b8] sm:$0xff] }
 0x134   :  { %v404_v17 = vld [vmem:[#allocation2 + $0x870] sm:$0xff]  ;;  %1147 = vmatpush.msrb.mxu3 %v604_v16  ;;  %v353_v14 = vld [vmem:[#allocation2 + $0x6d8] sm:$0xff] }
 0x135   :  { %v468_v18 = vld [vmem:[#allocation2 + $0xa70] sm:$0xff]  ;;  %1089 = vmatpush.msrb.mxu0 %v404_v17  ;;  %v153_v15 = vld [vmem:[#allocation2 + $0x98] sm:$0xff] }
 0x136   :  { %v532_v19 = vld [vmem:[#allocation2 + $0xc70] sm:$0xff]  ;;  %1109 = vmatpush.msrb.mxu1 %v468_v18  ;;  %v217_v16 = vld [vmem:[#allocation2 + $0x298] sm:$0xff] }
 0x137   :  { %v600_v20 = vld [vmem:[#allocation2 + $0xe90] sm:$0xff]  ;;  %1129 = vmatpush.msrb.mxu2 %v532_v19  ;;  %v281_v17 = vld [vmem:[#allocation2 + $0x498] sm:$0xff] }
 0x138   :  { %v400_v22 = vld [vmem:[#allocation2 + $0x850] sm:$0xff]  ;;  %1148 = vmatpush.msrb.mxu3 %v600_v20  ;;  %v349_v18 = vld [vmem:[#allocation2 + $0x6b8] sm:$0xff] }
 0x139   :  { %v464_v23 = vld [vmem:[#allocation2 + $0xa50] sm:$0xff]  ;;  %1090 = vmatpush.msrb.mxu0 %v400_v22  ;;  %v149_v19 = vld [vmem:[#allocation2 + $0x78] sm:$0xff] }
 0x13a   :  { %v528_v24 = vld [vmem:[#allocation2 + $0xc50] sm:$0xff]  ;;  %1110 = vmatpush.msrb.mxu1 %v464_v23  ;;  %v213_v20 = vld [vmem:[#allocation2 + $0x278] sm:$0xff] }
 0x13b   :  { %v596_v28 = vld [vmem:[#allocation2 + $0xe70] sm:$0xff]  ;;  %1130 = vmatpush.msrb.mxu2 %v528_v24  ;;  %v277_v22 = vld [vmem:[#allocation2 + $0x478] sm:$0xff] }
 0x13c   :  { %v396_v29 = vld [vmem:[#allocation2 + $0x830] sm:$0xff]  ;;  %1149 = vmatpush.msrb.mxu3 %v596_v28  ;;  %v345_v23 = vld [vmem:[#allocation2 + $0x698] sm:$0xff] }
 0x13d   :  { %v460_v30 = vld [vmem:[#allocation2 + $0xa30] sm:$0xff]  ;;  %1091 = vmatpush.msrb.mxu0 %v396_v29  ;;  %v145_v24 = vld [vmem:[#allocation2 + $0x58] sm:$0xff] }
 0x13e   :  { %v524_v3 = vld [vmem:[#allocation2 + $0xc30] sm:$0xff]  ;;  %1111 = vmatpush.msrb.mxu1 %v460_v30  ;;  %v209_v28 = vld [vmem:[#allocation2 + $0x258] sm:$0xff] }
 0x13f   :  { %v592_v31 = vld [vmem:[#allocation2 + $0xe50] sm:$0xff]  ;;  %1131 = vmatpush.msrb.mxu2 %v524_v3  ;;  %v273_v29 = vld [vmem:[#allocation2 + $0x458] sm:$0xff] }
 0x140   :  { %v392_v34 = vld [vmem:[#allocation2 + $0x810] sm:$0xff]  ;;  %1150 = vmatpush.msrb.mxu3 %v592_v31  ;;  %v341_v30 = vld [vmem:[#allocation2 + $0x678] sm:$0xff] }
 0x141   :  { %v456_v1 = vld [vmem:[#allocation2 + $0xa10] sm:$0xff]  ;;  %1092 = vmatpush.msrb.mxu0 %v392_v34  ;;  %v141_v3 = vld [vmem:[#allocation2 + $0x38] sm:$0xff] }
 0x142   :  { %v520_v35 = vld [vmem:[#allocation2 + $0xc10] sm:$0xff]  ;;  %1112 = vmatpush.msrb.mxu1 %v456_v1  ;;  %1093 = vmatmul.f32.vlgmr.msrb.gmra.mxu0 %v2091_v26  ;;  %v181_v26 = vld [vmem:[#allocation2 + $0x178] sm:$0xff] }
 0x143   :  { %v588_v2 = vld [vmem:[#allocation2 + $0xe30] sm:$0xff]  ;;  %1132 = vmatpush.msrb.mxu2 %v520_v35  ;;  %1157 = vmatpush.msra.mxu0 %v197_v9  ;;  %v205_v31 = vld [vmem:[#allocation2 + $0x238] sm:$0xff] }
 0x144   :  { %1151 = vmatpush.msrb.mxu3 %v588_v2  ;;  %v584_v38 = vld [vmem:[#allocation2 + $0xe10] sm:$0xff]  ;;  %1133 = vmatmul.f32.vlgmr.msrb.gmra.mxu2 %v2089_v21  ;;  %v185_v21 = vld [vmem:[#allocation2 + $0x198] sm:$0xff] }
 0x145   :  { %1177 = vmatpush.msra.mxu1 %v261_v36  ;;  %1197 = vmatpush.msra.mxu2 %v325_v37  ;;  %v269_v34 = vld [vmem:[#allocation2 + $0x438] sm:$0xff] }
 0x146   :  { %1152 = vmatpush.msrb.mxu3 %v584_v38  ;;  %1158 = vmatpush.msra.mxu0 %v193_v39  ;;  %v337_v1 = vld [vmem:[#allocation2 + $0x658] sm:$0xff] }
 0x147   :  { %1153 = vmatmul.f32.vlgmr.msrb.gmra.mxu3 %v2094_v27  ;;  %1178 = vmatpush.msra.mxu1 %v257_v40  ;;  %v245_v27 = vld [vmem:[#allocation2 + $0x378] sm:$0xff] }
 0x148   :  { %1198 = vmatpush.msra.mxu2 %v321_v41  ;;  %1217 = vmatpush.msra.mxu3 %v389_v42  ;;  %v137_v35 = vld [vmem:[#allocation2 + $0x18] sm:$0xff] }
 0x149   :  { %1113 = vmatmul.f32.vlgmr.msrb.gmra.mxu1 %v2097_v32  ;;  %1159 = vmatpush.msra.mxu0 %v189_v43  ;;  %v305_v32 = vld [vmem:[#allocation2 + $0x558] sm:$0xff] }
 0x14a   :  { %1179 = vmatpush.msra.mxu1 %v253_v44  ;;  %1199 = vmatpush.msra.mxu2 %v317_v45  ;;  %v201_v2 = vld [vmem:[#allocation2 + $0x218] sm:$0xff] }
 0x14b   :  { %1218 = vmatpush.msra.mxu3 %v385_v46  ;;  %1160 = vmatpush.msra.mxu0 %v185_v21  ;;  %v265_v9 = vld [vmem:[#allocation2 + $0x418] sm:$0xff] }
 0x14c   :  { %1180 = vmatpush.msra.mxu1 %v249_v47  ;;  %1200 = vmatpush.msra.mxu2 %v313_v48  ;;  %v333_v36 = vld [vmem:[#allocation2 + $0x638] sm:$0xff] }
 0x14d   :  { %1219 = vmatpush.msra.mxu3 %v381_v49  ;;  %1161 = vmatpush.msra.mxu0 %v181_v26  ;;  %v453_v37 = vld [vmem:[#allocation2 + $0x9f8] sm:$0xff] }
 0x14e   :  { %1181 = vmatpush.msra.mxu1 %v245_v27  ;;  %1201 = vmatpush.msra.mxu2 %v309_v50  ;;  %v517_v38 = vld [vmem:[#allocation2 + $0xbf8] sm:$0xff] }
 0x14f   :  { %1220 = vmatpush.msra.mxu3 %v377_v51  ;;  %1162 = vmatpush.msra.mxu0 %v177_v52  ;;  %v581_v39 = vld [vmem:[#allocation2 + $0xdf8] sm:$0xff] }
 0x150   :  { %1182 = vmatpush.msra.mxu1 %v241_v53  ;;  %1202 = vmatpush.msra.mxu2 %v305_v32  ;;  %v329_v40 = vld [vmem:[#allocation2 + $0x618] sm:$0xff] }
 0x151   :  { %1221 = vmatpush.msra.mxu3 %v373_v54  ;;  %1163 = vmatpush.msra.mxu0 %v173_v55  ;;  %v449_v41 = vld [vmem:[#allocation2 + $0x9d8] sm:$0xff] }
 0x152   :  { %1183 = vmatpush.msra.mxu1 %v237_v56  ;;  %1203 = vmatpush.msra.mxu2 %v301_v57  ;;  %v513_v42 = vld [vmem:[#allocation2 + $0xbd8] sm:$0xff] }
 0x153   :  { %1222 = vmatpush.msra.mxu3 %v369_v58  ;;  %1164 = vmatpush.msra.mxu0 %v169_v59  ;;  %v577_v43 = vld [vmem:[#allocation2 + $0xdd8] sm:$0xff] }
 0x154   :  { %1184 = vmatpush.msra.mxu1 %v233_v60  ;;  %1204 = vmatpush.msra.mxu2 %v297_v61  ;;  %v645_v44 = vld [vmem:[#allocation2 + $0xff8] sm:$0xff]  ;;  %v2121_v61 = vpop.f32.mrf.mxu0 }
 0x155   :  { %1223 = vmatpush.msra.mxu3 %v365_v62  ;;  %1165 = vmatpush.msra.mxu0 %v165_v63  ;;  %v445_v45 = vld [vmem:[#allocation2 + $0x9b8] sm:$0xff] }
 0x156   :  { %1185 = vmatpush.msra.mxu1 %v229_v0  ;;  %1205 = vmatpush.msra.mxu2 %v293_v4  ;;  %v509_v46 = vld [vmem:[#allocation2 + $0xbb8] sm:$0xff] }
 0x157   :  { %1224 = vmatpush.msra.mxu3 %v361_v5  ;;  %1166 = vmatpush.msra.mxu0 %v161_v6  ;;  %v573_v21 = vld [vmem:[#allocation2 + $0xdb8] sm:$0xff] }
 0x158   :  { %1186 = vmatpush.msra.mxu1 %v225_v7  ;;  %1206 = vmatpush.msra.mxu2 %v289_v8  ;;  %v641_v47 = vld [vmem:[#allocation2 + $0xfd8] sm:$0xff] }
 0x159   :  { %1225 = vmatpush.msra.mxu3 %v357_v10  ;;  %1167 = vmatpush.msra.mxu0 %v157_v11  ;;  %v441_v48 = vld [vmem:[#allocation2 + $0x998] sm:$0xff]  ;;  %v2123_v10 = vpop.f32.mrf.mxu1 }
 0x15a   :  { %1187 = vmatpush.msra.mxu1 %v221_v12  ;;  %1207 = vmatpush.msra.mxu2 %v285_v13  ;;  %v505_v49 = vld [vmem:[#allocation2 + $0xb98] sm:$0xff] }
 0x15b   :  { %1226 = vmatpush.msra.mxu3 %v353_v14  ;;  %1168 = vmatpush.msra.mxu0 %v153_v15  ;;  %v569_v26 = vld [vmem:[#allocation2 + $0xd98] sm:$0xff] }
 0x15c   :  { %1188 = vmatpush.msra.mxu1 %v217_v16  ;;  %1208 = vmatpush.msra.mxu2 %v281_v17  ;;  %v637_v27 = vld [vmem:[#allocation2 + $0xfb8] sm:$0xff] }
 0x15d   :  { %1227 = vmatpush.msra.mxu3 %v349_v18  ;;  %1169 = vmatpush.msra.mxu0 %v149_v19  ;;  %v437_v50 = vld [vmem:[#allocation2 + $0x978] sm:$0xff]  ;;  %v2125_v19 = vpop.f32.mrf.mxu2 }
 0x15e   :  { %1189 = vmatpush.msra.mxu1 %v213_v20  ;;  %1209 = vmatpush.msra.mxu2 %v277_v22  ;;  %v501_v51 = vld [vmem:[#allocation2 + $0xb78] sm:$0xff] }
 0x15f   :  { %1228 = vmatpush.msra.mxu3 %v345_v23  ;;  %1170 = vmatpush.msra.mxu0 %v145_v24  ;;  %v565_v52 = vld [vmem:[#allocation2 + $0xd78] sm:$0xff] }
 0x160   :  { %1190 = vmatpush.msra.mxu1 %v209_v28  ;;  %1210 = vmatpush.msra.mxu2 %v273_v29  ;;  %v633_v53 = vld [vmem:[#allocation2 + $0xf98] sm:$0xff]  ;;  %v2127_v28 = vpop.f32.mrf.mxu0 }
 0x161   :  { %1229 = vmatpush.msra.mxu3 %v341_v30  ;;  %1171 = vmatpush.msra.mxu0 %v141_v3  ;;  %v433_v32 = vld [vmem:[#allocation2 + $0x958] sm:$0xff] }
 0x162   :  { %1191 = vmatpush.msra.mxu1 %v205_v31  ;;  %1211 = vmatpush.msra.mxu2 %v269_v34  ;;  %v497_v54 = vld [vmem:[#allocation2 + $0xb58] sm:$0xff]  ;;  %v2129_v31 = vpop.f32.mrf.mxu3 }
 0x163   :  { %1230 = vmatpush.msra.mxu3 %v337_v1  ;;  %1172 = vmatpush.msra.mxu0 %v137_v35  ;;  %v561_v55 = vld [vmem:[#allocation2 + $0xd58] sm:$0xff]  ;;  %v1779_v1 = vld.sshfl [vmem:[#allocation1 + $0x10] sm:$0xff pattern:$0x73625140] }
 0x164   :  { %1192 = vmatpush.msra.mxu1 %v201_v2  ;;  %1212 = vmatpush.msra.mxu2 %v265_v9  ;;  %v629_v56 = vld [vmem:[#allocation2 + $0xf78] sm:$0xff]  ;;  %v2131_v2 = vld [vmem:[#allocation5] sm:$0xf]  ;;  %v2133_v9 = vpop.f32.mrf.mxu1 }
 0x165   :  { %1231 = vmatpush.msra.mxu3 %v333_v36  ;;  %1237 = vmatpush.msrb.mxu0 %v453_v37  ;;  %v429_v57 = vld [vmem:[#allocation2 + $0x938] sm:$0xff] }
 0x166   :  { %1257 = vmatpush.msrb.mxu1 %v517_v38  ;;  %1277 = vmatpush.msrb.mxu2 %v581_v39  ;;  %v493_v58 = vld [vmem:[#allocation2 + $0xb38] sm:$0xff]  ;;  %v1780_v39 = vld.sshfl [vmem:[#allocation1 + $0x18] sm:$0xff pattern:$0x73625140] }
 0x167   :  { %1232 = vmatpush.msra.mxu3 %v329_v40  ;;  %1238 = vmatpush.msrb.mxu0 %v449_v41  ;;  %v557_v59 = vld [vmem:[#allocation2 + $0xd38] sm:$0xff] }
 0x168   :  { %1258 = vmatpush.msrb.mxu1 %v513_v42  ;;  %1278 = vmatpush.msrb.mxu2 %v577_v43  ;;  %v625_v60 = vld [vmem:[#allocation2 + $0xf58] sm:$0xff]  ;;  %v648_v42 = vperm.slane %v2131_v2, 0 }
 0x169   :  { %1297 = vmatpush.msrb.mxu3 %v645_v44  ;;  %1239 = vmatpush.msrb.mxu0 %v445_v45  ;;  %v425_v62 = vld [vmem:[#allocation2 + $0x918] sm:$0xff]  ;;  %v649_v45 = vperm.slane %v2131_v2, 1 }
 0x16a   :  { %1259 = vmatpush.msrb.mxu1 %v509_v46  ;;  %1279 = vmatpush.msrb.mxu2 %v573_v21  ;;  %v489_v63 = vld [vmem:[#allocation2 + $0xb18] sm:$0xff]  ;;  %v2138_v46 = vpop.f32.mrf.mxu2 }
 0x16b   :  { %1298 = vmatpush.msrb.mxu3 %v641_v47  ;;  %1240 = vmatpush.msrb.mxu0 %v441_v48  ;;  %v553_v0 = vld [vmem:[#allocation2 + $0xd18] sm:$0xff]  ;;  %v854_v47 = vpop.f32.mrf.mxu0 }
 0x16c   :  { %1260 = vmatpush.msrb.mxu1 %v505_v49  ;;  %1280 = vmatpush.msrb.mxu2 %v569_v26  ;;  %v621_v4 = vld [vmem:[#allocation2 + $0xf38] sm:$0xff] }
 0x16d   :  { %1299 = vmatpush.msrb.mxu3 %v637_v27  ;;  %1241 = vmatpush.msrb.mxu0 %v437_v50  ;;  %v421_v5 = vld [vmem:[#allocation2 + $0x8f8] sm:$0xff]  ;;  %v695_v27 = vadd.f32 %v2121_v61, %v648_v42 }
 0x16e   :  { %1261 = vmatpush.msrb.mxu1 %v501_v51  ;;  %1281 = vmatpush.msrb.mxu2 %v565_v52  ;;  %v485_v6 = vld [vmem:[#allocation2 + $0xaf8] sm:$0xff]  ;;  %v855_v52 = vadd.f32 %v854_v47, %v649_v45  ;;  %v1397_v45 = vld [vmem:[#allocation7 + $0x260] sm:$0xff] }
 0x16f   :  { %1300 = vmatpush.msrb.mxu3 %v633_v53  ;;  %1242 = vmatpush.msrb.mxu0 %v433_v32  ;;  %v549_v7 = vld [vmem:[#allocation2 + $0xcf8] sm:$0xff]  ;;  %v2142_v53 = vpop.f32.mrf.mxu3  ;;  %v1781_v32 = vld.sshfl [vmem:[#allocation1 + $0x30] sm:$0xff pattern:$0x73625140] }
 0x170   :  { %1262 = vmatpush.msrb.mxu1 %v497_v54  ;;  %1282 = vmatpush.msrb.mxu2 %v561_v55  ;;  %v617_v8 = vld [vmem:[#allocation2 + $0xf18] sm:$0xff]  ;;  %v1349_v54 = vld [vmem:[#allocation7 + $0xe0] sm:$0xff] }
 0x171   :  { %1301 = vmatpush.msrb.mxu3 %v629_v56  ;;  %1243 = vmatpush.msrb.mxu0 %v429_v57  ;;  %v417_v11 = vld [vmem:[#allocation2 + $0x8d8] sm:$0xff]  ;;  %v1381_v55 = vld [vmem:[#allocation7 + $0x1e0] sm:$0xff]  ;;  %v715_v57 = vadd.f32 %v2123_v10, %v695_v27 }
 0x172   :  { %1263 = vmatpush.msrb.mxu1 %v493_v58  ;;  %1283 = vmatpush.msrb.mxu2 %v557_v59  ;;  %v481_v12 = vld [vmem:[#allocation2 + $0xad8] sm:$0xff]  ;;  %v1783_v59 = vld.sshfl [vmem:[#allocation1 + $0x38] sm:$0xff pattern:$0x73625140] }
 0x173   :  { %1302 = vmatpush.msrb.mxu3 %v625_v60  ;;  %1244 = vmatpush.msrb.mxu0 %v425_v62  ;;  %v545_v13 = vld [vmem:[#allocation2 + $0xcd8] sm:$0xff] }
 0x174   :  { %1264 = vmatpush.msrb.mxu1 %v489_v63  ;;  %1284 = vmatpush.msrb.mxu2 %v553_v0  ;;  %v613_v14 = vld [vmem:[#allocation2 + $0xef8] sm:$0xff]  ;;  %v894_v63 = vpop.f32.mrf.mxu2  ;;  %v1413_v0 = vld [vmem:[#allocation7 + $0x2e0] sm:$0xff] }
 0x175   :  { %1303 = vmatpush.msrb.mxu3 %v621_v4  ;;  %1245 = vmatpush.msrb.mxu0 %v421_v5  ;;  %v413_v15 = vld [vmem:[#allocation2 + $0x8b8] sm:$0xff]  ;;  %v1784_v4 = vld.sshfl [vmem:[#allocation1 + $0x28] sm:$0xff pattern:$0x73625140] }
 0x176   :  { %1265 = vmatpush.msrb.mxu1 %v485_v6  ;;  %1285 = vmatpush.msrb.mxu2 %v549_v7  ;;  %v477_v16 = vld [vmem:[#allocation2 + $0xab8] sm:$0xff]  ;;  %v1345_v5 = vld [vmem:[#allocation7 + $0xc0] sm:$0xff] }
 0x177   :  { %1304 = vmatpush.msrb.mxu3 %v617_v8  ;;  %1246 = vmatpush.msrb.mxu0 %v417_v11  ;;  %v541_v17 = vld [vmem:[#allocation2 + $0xcb8] sm:$0xff]  ;;  %v1377_v6 = vld [vmem:[#allocation7 + $0x1c0] sm:$0xff]  ;;  %v735_v8 = vadd.f32 %v2125_v19, %v715_v57  ;;  %v934_v19 = vpop.f32.mrf.mxu0 }
 0x178   :  { %1266 = vmatpush.msrb.mxu1 %v481_v12  ;;  %v609_v18 = vld [vmem:[#allocation2 + $0xed8] sm:$0xff]  ;;  %1286 = vmatpush.msrb.mxu2 %v545_v13  ;;  %v914_v13 = vpop.f32.mrf.mxu3  ;;  %v1321_v57 = vld [vmem:[#allocation7] sm:$0xff] }
 0x179   :  { %1305 = vmatpush.msrb.mxu3 %v613_v14  ;;  %v409_v20 = vld [vmem:[#allocation2 + $0x898] sm:$0xff]  ;;  %1247 = vmatpush.msrb.mxu0 %v413_v15  ;;  %v1409_v14 = vld [vmem:[#allocation7 + $0x2c0] sm:$0xff] }
 0x17a   :  { %v473_v22 = vld [vmem:[#allocation2 + $0xa98] sm:$0xff]  ;;  %1267 = vmatpush.msrb.mxu1 %v477_v16  ;;  %1287 = vmatpush.msrb.mxu2 %v541_v17  ;;  %v1341_v15 = vld [vmem:[#allocation7 + $0xa0] sm:$0xff] }
 0x17b   :  { %v537_v23 = vld [vmem:[#allocation2 + $0xc98] sm:$0xff]  ;;  %1306 = vmatpush.msrb.mxu3 %v609_v18  ;;  %1248 = vmatpush.msrb.mxu0 %v409_v20  ;;  %v1373_v16 = vld [vmem:[#allocation7 + $0x1a0] sm:$0xff]  ;;  %v755_v18 = vadd.f32 %v2129_v31, %v735_v8  ;;  %v1346_v8 = vld [vmem:[#allocation7 + $0xc8] sm:$0xff] }
 0x17c   :  { %v605_v24 = vld [vmem:[#allocation2 + $0xeb8] sm:$0xff]  ;;  %1268 = vmatpush.msrb.mxu1 %v473_v22  ;;  %1288 = vmatpush.msrb.mxu2 %v537_v23 }
 0x17d   :  { %v405_v29 = vld [vmem:[#allocation2 + $0x878] sm:$0xff]  ;;  %1307 = vmatpush.msrb.mxu3 %v605_v24  ;;  %1213 = vmatmul.f32.vlgmr.msra.gmra.mxu2 %v1779_v1  ;;  %v1405_v24 = vld [vmem:[#allocation7 + $0x2a0] sm:$0xff] }
 0x17e   :  { %v469_v30 = vld [vmem:[#allocation2 + $0xa78] sm:$0xff]  ;;  %1249 = vmatpush.msrb.mxu0 %v405_v29  ;;  %1233 = vmatmul.f32.vlgmr.msra.gmra.mxu3 %v1780_v39  ;;  %v1337_v29 = vld [vmem:[#allocation7 + $0x80] sm:$0xff] }
 0x17f   :  { %v533_v3 = vld [vmem:[#allocation2 + $0xc78] sm:$0xff]  ;;  %1269 = vmatpush.msrb.mxu1 %v469_v30  ;;  %1173 = vmatmul.f32.vlgmr.msra.gmra.mxu0 %v2110_v25  ;;  %v1369_v30 = vld [vmem:[#allocation7 + $0x180] sm:$0xff] }
 0x180   :  { %v601_v34 = vld [vmem:[#allocation2 + $0xe98] sm:$0xff]  ;;  %1289 = vmatpush.msrb.mxu2 %v533_v3  ;;  %1193 = vmatmul.f32.vlgmr.msra.gmra.mxu1 %v2114_v33  ;;  %v874_v33 = vpop.f32.mrf.mxu1  ;;  %v1365_v39 = vld [vmem:[#allocation7 + $0x160] sm:$0xff] }
 0x181   :  { %v401_v35 = vld [vmem:[#allocation2 + $0x858] sm:$0xff]  ;;  %1308 = vmatpush.msrb.mxu3 %v601_v34  ;;  %v875_v62 = vadd.f32 %v874_v33, %v855_v52  ;;  %v775_v34 = vadd.f32 %v2127_v28, %v755_v18  ;;  %v974_v28 = vpop.f32.mrf.mxu2  ;;  %v1357_v52 = vld [vmem:[#allocation7 + $0x120] sm:$0xff]  ;;  %v1410_v18 = vld [vmem:[#allocation7 + $0x2c8] sm:$0xff] }
 0x182   :  { %v465_v36 = vld [vmem:[#allocation2 + $0xa58] sm:$0xff]  ;;  %1250 = vmatpush.msrb.mxu0 %v401_v35 }
 0x183   :  { %v529_v37 = vld [vmem:[#allocation2 + $0xc58] sm:$0xff]  ;;  %1270 = vmatpush.msrb.mxu1 %v465_v36  ;;  %v895_v10 = vadd.f32 %v894_v63, %v875_v62  ;;  %v1350_v63 = vld [vmem:[#allocation7 + $0xe8] sm:$0xff] }
 0x184   :  { %v597_v38 = vld [vmem:[#allocation2 + $0xe78] sm:$0xff]  ;;  %1290 = vmatpush.msrb.mxu2 %v529_v37  ;;  %v1401_v37 = vld [vmem:[#allocation7 + $0x280] sm:$0xff] }
 0x185   :  { %v397_v40 = vld [vmem:[#allocation2 + $0x838] sm:$0xff]  ;;  %1309 = vmatpush.msrb.mxu3 %v597_v38  ;;  %v915_v20 = vadd.f32 %v914_v13, %v895_v10  ;;  %v1333_v38 = vld [vmem:[#allocation7 + $0x60] sm:$0xff]  ;;  %v1378_v10 = vld [vmem:[#allocation7 + $0x1c8] sm:$0xff] }
 0x186   :  { %v461_v41 = vld [vmem:[#allocation2 + $0xa38] sm:$0xff]  ;;  %1251 = vmatpush.msrb.mxu0 %v397_v40 }
 0x187   :  { %v525_v43 = vld [vmem:[#allocation2 + $0xc38] sm:$0xff]  ;;  %1271 = vmatpush.msrb.mxu1 %v461_v41  ;;  %v935_v1 = vadd.f32 %v934_v19, %v915_v20  ;;  %v795_v41 = vadd.f32 %v2133_v9, %v775_v34  ;;  %v994_v9 = vpop.f32.mrf.mxu3  ;;  %v1338_v19 = vld [vmem:[#allocation7 + $0x88] sm:$0xff]  ;;  %v650_v34 = vperm.slane %v2131_v2, 2 }
 0x188   :  { %v593_v44 = vld [vmem:[#allocation2 + $0xe58] sm:$0xff]  ;;  %1291 = vmatpush.msrb.mxu2 %v525_v43  ;;  %v954_v31 = vpop.f32.mrf.mxu1 }
 0x189   :  { %v393_v25 = vld [vmem:[#allocation2 + $0x818] sm:$0xff]  ;;  %1310 = vmatpush.msrb.mxu3 %v593_v44  ;;  %v955_v42 = vadd.f32 %v954_v31, %v935_v1  ;;  %v1334_v31 = vld [vmem:[#allocation7 + $0x68] sm:$0xff] }
 0x18a   :  { %v457_v21 = vld [vmem:[#allocation2 + $0xa18] sm:$0xff]  ;;  %1252 = vmatpush.msrb.mxu0 %v393_v25  ;;  %v1329_v25 = vld [vmem:[#allocation7 + $0x40] sm:$0xff] }
 0x18b   :  { %v521_v48 = vld [vmem:[#allocation2 + $0xc18] sm:$0xff]  ;;  %1272 = vmatpush.msrb.mxu1 %v457_v21  ;;  %v1361_v21 = vld [vmem:[#allocation7 + $0x140] sm:$0xff] }
 0x18c   :  { %v589_v49 = vld [vmem:[#allocation2 + $0xe38] sm:$0xff]  ;;  %1292 = vmatpush.msrb.mxu2 %v521_v48  ;;  %1273 = vmatmul.f32.vlgmr.msrb.gmra.mxu1 %v1784_v4  ;;  %v815_v48 = vadd.f32 %v2138_v46, %v795_v41  ;;  %v1385_v4 = vld [vmem:[#allocation7 + $0x200] sm:$0xff] }
 0x18d   :  { %v1351_v26 = vld [vmem:[#allocation7 + $0xf0] sm:$0xff]  ;;  %1311 = vmatpush.msrb.mxu3 %v589_v49  ;;  %1293 = vmatmul.f32.vlgmr.msrb.gmra.mxu2 %v1781_v32  ;;  %v975_v49 = vadd.f32 %v974_v28, %v955_v42  ;;  %v1376_v13 = vld [vmem:[#allocation7 + $0x1b8] sm:$0xff] }
 0x18e   :  { %v1383_v50 = vld [vmem:[#allocation7 + $0x1f0] sm:$0xff]  ;;  %1455 = vmatpush.msra.mxu0 %v1351_v26  ;;  %v2151_v32 = vadd.f32 %v2142_v53, %v815_v48  ;;  %v1384_v53 = vld [vmem:[#allocation7 + $0x1f8] sm:$0xff] }
 0x18f   :  { %v585_v51 = vld [vmem:[#allocation2 + $0xe18] sm:$0xff]  ;;  %1475 = vmatpush.msra.mxu1 %v1383_v50  ;;  %v1393_v50 = vld [vmem:[#allocation7 + $0x240] sm:$0xff] }
 0x190   :  { %1312 = vmatpush.msrb.mxu3 %v585_v51  ;;  %v1415_v56 = vld [vmem:[#allocation7 + $0x2f0] sm:$0xff]  ;;  %1456 = vmatpush.msra.mxu0 %v1349_v54  ;;  %v1325_v51 = vld [vmem:[#allocation7 + $0x20] sm:$0xff]  ;;  %v2153_v54 = vadd.f32 %v994_v9, %v975_v49  ;;  %v1340_v20 = vld [vmem:[#allocation7 + $0x98] sm:$0xff] }
 0x191   :  { %v1782_v58 = vld.sshfl [vmem:[#allocation1 + $0x20] sm:$0xff pattern:$0x73625140]  ;;  %1313 = vmatmul.f32.vlgmr.msrb.gmra.mxu3 %v1783_v59  ;;  %1476 = vmatpush.msra.mxu1 %v1381_v55  ;;  %v1317_v59 = vmax.f32 %v2151_v32, 0.0  ;;  %v1398_v49 = vld [vmem:[#allocation7 + $0x268] sm:$0xff]  ;;  %v1421_v32 = vld [vmem:[#allocation7 + $0x320] sm:$0xff] }
 0x192   :  { %1253 = vmatmul.f32.vlgmr.msrb.gmra.mxu0 %v1782_v58  ;;  %v1347_v60 = vld [vmem:[#allocation7 + $0xd0] sm:$0xff]  ;;  %1495 = vmatpush.msra.mxu2 %v1415_v56  ;;  %v1389_v56 = vld [vmem:[#allocation7 + $0x220] sm:$0xff]  ;;  %v1404_v1 = vld [vmem:[#allocation7 + $0x298] sm:$0xff] }
 0x193   :  { %v1379_v61 = vld [vmem:[#allocation7 + $0x1d0] sm:$0xff]  ;;  %1457 = vmatpush.msra.mxu0 %v1347_v60  ;;  %v1353_v58 = vld [vmem:[#allocation7 + $0x100] sm:$0xff]  ;;  %v1318_v60 = vmax.f32 %v2153_v54, 0.0  ;;  %v1332_v41 = vld [vmem:[#allocation7 + $0x58] sm:$0xff]  ;;  %v1054_v48 = vpop.f32.mrf.mxu2 }
 0x194   :  { %1477 = vmatpush.msra.mxu1 %v1379_v61  ;;  %v1411_v7 = vld [vmem:[#allocation7 + $0x2d0] sm:$0xff]  ;;  %1496 = vmatpush.msra.mxu2 %v1413_v0  ;;  %v1352_v61 = vld [vmem:[#allocation7 + $0xf8] sm:$0xff]  ;;  %v1382_v0 = vld [vmem:[#allocation7 + $0x1e8] sm:$0xff] }
 0x195   :  { %v1343_v11 = vld [vmem:[#allocation7 + $0xb0] sm:$0xff]  ;;  %1458 = vmatpush.msra.mxu0 %v1345_v5  ;;  %v1348_v5 = vld [vmem:[#allocation7 + $0xd8] sm:$0xff] }
 0x196   :  { %v1375_v12 = vld [vmem:[#allocation7 + $0x1b0] sm:$0xff]  ;;  %1478 = vmatpush.msra.mxu1 %v1377_v6  ;;  %1497 = vmatpush.msra.mxu2 %v1411_v7  ;;  %v1380_v6 = vld [vmem:[#allocation7 + $0x1d8] sm:$0xff] }
 0x197   :  { %1459 = vmatpush.msra.mxu0 %v1343_v11  ;;  %v1407_v17 = vld [vmem:[#allocation7 + $0x2b0] sm:$0xff]  ;;  %v1416_v7 = vld [vmem:[#allocation7 + $0x2f8] sm:$0xff]  ;;  %v1414_v11 = vld [vmem:[#allocation7 + $0x2e8] sm:$0xff] }
 0x198   :  { %1479 = vmatpush.msra.mxu1 %v1375_v12  ;;  %v1339_v22 = vld [vmem:[#allocation7 + $0x90] sm:$0xff]  ;;  %1498 = vmatpush.msra.mxu2 %v1409_v14  ;;  %v1344_v12 = vld [vmem:[#allocation7 + $0xb8] sm:$0xff] }
 0x199   :  { %v1371_v23 = vld [vmem:[#allocation7 + $0x190] sm:$0xff]  ;;  %1460 = vmatpush.msra.mxu0 %v1341_v15  ;;  %v1412_v14 = vld [vmem:[#allocation7 + $0x2d8] sm:$0xff]  ;;  %v1342_v15 = vld [vmem:[#allocation7 + $0xa8] sm:$0xff] }
 0x19a   :  { %1480 = vmatpush.msra.mxu1 %v1373_v16  ;;  %1499 = vmatpush.msra.mxu2 %v1407_v17  ;;  %v1403_v3 = vld [vmem:[#allocation7 + $0x290] sm:$0xff]  ;;  %v1374_v16 = vld [vmem:[#allocation7 + $0x1a8] sm:$0xff]  ;;  %v1364_v42 = vld [vmem:[#allocation7 + $0x158] sm:$0xff] }
 0x19b   :  { %1461 = vmatpush.msra.mxu0 %v1339_v22  ;;  %v1335_v35 = vld [vmem:[#allocation7 + $0x70] sm:$0xff]  ;;  %v1372_v22 = vld [vmem:[#allocation7 + $0x198] sm:$0xff] }
 0x19c   :  { %1481 = vmatpush.msra.mxu1 %v1371_v23  ;;  %v1367_v36 = vld [vmem:[#allocation7 + $0x170] sm:$0xff]  ;;  %1500 = vmatpush.msra.mxu2 %v1405_v24  ;;  %v1408_v23 = vld [vmem:[#allocation7 + $0x2b8] sm:$0xff]  ;;  %v1370_v24 = vld [vmem:[#allocation7 + $0x188] sm:$0xff] }
 0x19d   :  { %1462 = vmatpush.msra.mxu0 %v1337_v29  ;;  %v1399_v40 = vld [vmem:[#allocation7 + $0x270] sm:$0xff]  ;;  %v1406_v29 = vld [vmem:[#allocation7 + $0x2a8] sm:$0xff]  ;;  %v1360_v9 = vld [vmem:[#allocation7 + $0x138] sm:$0xff] }
 0x19e   :  { %1482 = vmatpush.msra.mxu1 %v1369_v30  ;;  %1501 = vmatpush.msra.mxu2 %v1403_v3  ;;  %v1331_v43 = vld [vmem:[#allocation7 + $0x50] sm:$0xff]  ;;  %v1336_v30 = vld [vmem:[#allocation7 + $0x78] sm:$0xff] }
 0x19f   :  { %1463 = vmatpush.msra.mxu0 %v1335_v35  ;;  %v1363_v44 = vld [vmem:[#allocation7 + $0x150] sm:$0xff]  ;;  %v1368_v3 = vld [vmem:[#allocation7 + $0x178] sm:$0xff]  ;;  %v1445_v35 = vld [vmem:[#allocation7 + $0x3e0] sm:$0xff] }
 0x1a0   :  { %1483 = vmatpush.msra.mxu1 %v1367_v36  ;;  %1502 = vmatpush.msra.mxu2 %v1401_v37  ;;  %v1395_v47 = vld [vmem:[#allocation7 + $0x250] sm:$0xff]  ;;  %v1366_v37 = vld [vmem:[#allocation7 + $0x168] sm:$0xff] }
 0x1a1   :  { %1464 = vmatpush.msra.mxu0 %v1333_v38  ;;  %v1327_v26 = vld [vmem:[#allocation7 + $0x30] sm:$0xff]  ;;  %v1014_v38 = vpop.f32.mrf.mxu0 }
 0x1a2   :  { %1484 = vmatpush.msra.mxu1 %v1365_v39  ;;  %1503 = vmatpush.msra.mxu2 %v1399_v40  ;;  %v1359_v27 = vld [vmem:[#allocation7 + $0x130] sm:$0xff]  ;;  %v1402_v39 = vld [vmem:[#allocation7 + $0x288] sm:$0xff]  ;;  %v1441_v40 = vld [vmem:[#allocation7 + $0x3c0] sm:$0xff] }
 0x1a3   :  { %1465 = vmatpush.msra.mxu0 %v1331_v43  ;;  %v1391_v33 = vld [vmem:[#allocation7 + $0x230] sm:$0xff]  ;;  %v1015_v43 = vadd.f32 %v1014_v38, %v650_v34  ;;  %v1436_v34 = vld [vmem:[#allocation7 + $0x398] sm:$0xff] }
 0x1a4   :  { %1485 = vmatpush.msra.mxu1 %v1363_v44  ;;  %1504 = vmatpush.msra.mxu2 %v1397_v45  ;;  %v1323_v46 = vld [vmem:[#allocation7 + $0x10] sm:$0xff]  ;;  %v1400_v44 = vld [vmem:[#allocation7 + $0x278] sm:$0xff]  ;;  %v1330_v45 = vld [vmem:[#allocation7 + $0x48] sm:$0xff] }
 0x1a5   :  { %1466 = vmatpush.msra.mxu0 %v1329_v25  ;;  %v1355_v55 = vld [vmem:[#allocation7 + $0x110] sm:$0xff]  ;;  %v1362_v25 = vld [vmem:[#allocation7 + $0x148] sm:$0xff]  ;;  %v1424_v38 = vld [vmem:[#allocation7 + $0x338] sm:$0xff] }
 0x1a6   :  { %1486 = vmatpush.msra.mxu1 %v1361_v21  ;;  %1505 = vmatpush.msra.mxu2 %v1395_v47  ;;  %v1387_v62 = vld [vmem:[#allocation7 + $0x210] sm:$0xff]  ;;  %v1034_v21 = vpop.f32.mrf.mxu1 }
 0x1a7   :  { %1467 = vmatpush.msra.mxu0 %v1327_v26  ;;  %v1447_v17 = vld [vmem:[#allocation7 + $0x3f0] sm:$0xff]  ;;  %v1035_v47 = vadd.f32 %v1034_v21, %v1015_v43  ;;  %v1437_v26 = vld [vmem:[#allocation7 + $0x3a0] sm:$0xff] }
 0x1a8   :  { %1487 = vmatpush.msra.mxu1 %v1359_v27  ;;  %1506 = vmatpush.msra.mxu2 %v1393_v50  ;;  %v1443_v36 = vld [vmem:[#allocation7 + $0x3d0] sm:$0xff]  ;;  %v1328_v27 = vld [vmem:[#allocation7 + $0x38] sm:$0xff] }
 0x1a9   :  { %1468 = vmatpush.msra.mxu0 %v1325_v51  ;;  %1515 = vmatpush.msra.mxu3 %v1447_v17  ;;  %v1439_v28 = vld [vmem:[#allocation7 + $0x3b0] sm:$0xff]  ;;  %v1055_v50 = vadd.f32 %v1054_v48, %v1035_v47  ;;  %v1396_v51 = vld [vmem:[#allocation7 + $0x258] sm:$0xff]  ;;  %v1386_v17 = vld [vmem:[#allocation7 + $0x208] sm:$0xff] }
 0x1aa   :  { %1488 = vmatpush.msra.mxu1 %v1357_v52  ;;  %1507 = vmatpush.msra.mxu2 %v1391_v33  ;;  %v1435_v52 = vld [vmem:[#allocation7 + $0x390] sm:$0xff]  ;;  %v1326_v33 = vld [vmem:[#allocation7 + $0x28] sm:$0xff] }
 0x1ab   :  { %1469 = vmatpush.msra.mxu0 %v1323_v46  ;;  %1516 = vmatpush.msra.mxu3 %v1445_v35  ;;  %v1358_v46 = vld [vmem:[#allocation7 + $0x128] sm:$0xff]  ;;  %v1419_v54 = vld [vmem:[#allocation7 + $0x310] sm:$0xff]  ;;  %v1432_v35 = vld [vmem:[#allocation7 + $0x378] sm:$0xff] }
 0x1ac   :  { %1489 = vmatpush.msra.mxu1 %v1355_v55  ;;  %1508 = vmatpush.msra.mxu2 %v1389_v56  ;;  %v1074_v55 = vpop.f32.mrf.mxu3 }
 0x1ad   :  { %1470 = vmatpush.msra.mxu0 %v1321_v57  ;;  %1517 = vmatpush.msra.mxu3 %v1443_v36  ;;  %v1075_v56 = vadd.f32 %v1074_v55, %v1055_v50  ;;  %v1394_v57 = vld [vmem:[#allocation7 + $0x248] sm:$0xff] }
 0x1ae   :  { %1490 = vmatpush.msra.mxu1 %v1353_v58  ;;  %1471 = vmatmul.f32.vlgmr.msra.gmra.mxu0 %v1317_v59  ;;  %v1433_v58 = vld [vmem:[#allocation7 + $0x380] sm:$0xff]  ;;  %v1430_v36 = vld [vmem:[#allocation7 + $0x368] sm:$0xff] }
 0x1af   :  { %1491 = vmatmul.f32.vlgmr.msra.gmra.mxu1 %v1318_v60  ;;  %1535 = vmatpush.msrb.mxu0 %v1352_v61  ;;  %v1324_v61 = vld [vmem:[#allocation7 + $0x18] sm:$0xff]  ;;  %v1631_v55 = vld [vmem:[%s2274_s5 + $0x70] sm:$0xff] }
 0x1b0   :  { %1555 = vmatpush.msrb.mxu1 %v1384_v53  ;;  %1509 = vmatpush.msra.mxu2 %v1387_v62  ;;  %v1356_v53 = vld [vmem:[#allocation7 + $0x118] sm:$0xff] }
 0x1b1   :  { %1536 = vmatpush.msrb.mxu0 %v1350_v63  ;;  %1518 = vmatpush.msra.mxu3 %v1441_v40  ;;  %v1392_v63 = vld [vmem:[#allocation7 + $0x238] sm:$0xff] }
 0x1b2   :  { %1556 = vmatpush.msrb.mxu1 %v1382_v0  ;;  %1510 = vmatpush.msra.mxu2 %v1385_v4  ;;  %v1431_v0 = vld [vmem:[#allocation7 + $0x370] sm:$0xff]  ;;  %v1322_v4 = vld [vmem:[#allocation7 + $0x8] sm:$0xff]  ;;  %v1420_v40 = vld [vmem:[#allocation7 + $0x318] sm:$0xff] }
 0x1b3   :  { %1537 = vmatpush.msrb.mxu0 %v1348_v5  ;;  %1519 = vmatpush.msra.mxu3 %v1439_v28  ;;  %v1354_v5 = vld [vmem:[#allocation7 + $0x108] sm:$0xff] }
 0x1b4   :  { %1557 = vmatpush.msrb.mxu1 %v1380_v6  ;;  %1575 = vmatpush.msrb.mxu2 %v1416_v7 }
 0x1b5   :  { %1538 = vmatpush.msrb.mxu0 %v1346_v8  ;;  %1520 = vmatpush.msra.mxu3 %v1437_v26  ;;  %v1390_v8 = vld [vmem:[#allocation7 + $0x228] sm:$0xff] }
 0x1b6   :  { %1558 = vmatpush.msrb.mxu1 %v1378_v10  ;;  %1576 = vmatpush.msrb.mxu2 %v1414_v11  ;;  %v1429_v10 = vld [vmem:[#allocation7 + $0x360] sm:$0xff] }
 0x1b7   :  { %1539 = vmatpush.msrb.mxu0 %v1344_v12  ;;  %1521 = vmatpush.msra.mxu3 %v1435_v52 }
 0x1b8   :  { %1559 = vmatpush.msrb.mxu1 %v1376_v13  ;;  %1577 = vmatpush.msrb.mxu2 %v1412_v14  ;;  %v1388_v13 = vld [vmem:[#allocation7 + $0x218] sm:$0xff]  ;;  %v1427_v14 = vld [vmem:[#allocation7 + $0x350] sm:$0xff] }
 0x1b9   :  { %1540 = vmatpush.msrb.mxu0 %v1342_v15  ;;  %1522 = vmatpush.msra.mxu3 %v1433_v58  ;;  %v1647_v58 = vld [vmem:[%s2274_s5 + $0xf0] sm:$0xff] }
 0x1ba   :  { %1560 = vmatpush.msrb.mxu1 %v1374_v16  ;;  %1578 = vmatpush.msrb.mxu2 %v1410_v18  ;;  %v1425_v18 = vld [vmem:[#allocation7 + $0x340] sm:$0xff] }
 0x1bb   :  { %1541 = vmatpush.msrb.mxu0 %v1340_v20  ;;  %1523 = vmatpush.msra.mxu3 %v1431_v0  ;;  %v1644_v0 = vld [vmem:[%s2274_s5 + $0xd8] sm:$0xff] }
 0x1bc   :  { %1561 = vmatpush.msrb.mxu1 %v1372_v22  ;;  %1579 = vmatpush.msrb.mxu2 %v1408_v23  ;;  %v1423_v22 = vld [vmem:[#allocation7 + $0x330] sm:$0xff] }
 0x1bd   :  { %1542 = vmatpush.msrb.mxu0 %v1338_v19  ;;  %1524 = vmatpush.msra.mxu3 %v1429_v10  ;;  %v1446_v19 = vld [vmem:[#allocation7 + $0x3e8] sm:$0xff]  ;;  %v1641_v10 = vld [vmem:[%s2274_s5 + $0xc0] sm:$0xff] }
 0x1be   :  { %1562 = vmatpush.msrb.mxu1 %v1370_v24  ;;  %1580 = vmatpush.msrb.mxu2 %v1406_v29  ;;  %v1444_v24 = vld [vmem:[#allocation7 + $0x3d8] sm:$0xff]  ;;  %v1442_v29 = vld [vmem:[#allocation7 + $0x3c8] sm:$0xff] }
 0x1bf   :  { %1543 = vmatpush.msrb.mxu0 %v1336_v30  ;;  %v1094_v62 = vpop.f32.mrf.mxu0  ;;  %1525 = vmatpush.msra.mxu3 %v1427_v14  ;;  %v1440_v30 = vld [vmem:[#allocation7 + $0x3b8] sm:$0xff] }
 0x1c0   :  { %1563 = vmatpush.msrb.mxu1 %v1368_v3  ;;  %1581 = vmatpush.msrb.mxu2 %v1404_v1  ;;  %v1095_v6 = vadd.f32 %v1094_v62, %v1075_v56  ;;  %v1438_v3 = vld [vmem:[#allocation7 + $0x3a8] sm:$0xff]  ;;  %v1645_v62 = vld [vmem:[%s2274_s5 + $0xe0] sm:$0xff]  ;;  %v1622_v14 = vld [vmem:[%s2274_s5 + $0x28] sm:$0xff] }
 0x1c1   :  { %1544 = vmatpush.msrb.mxu0 %v1334_v31  ;;  %1526 = vmatpush.msra.mxu3 %v1425_v18  ;;  %v1434_v1 = vld [vmem:[#allocation7 + $0x388] sm:$0xff]  ;;  %v1428_v31 = vld [vmem:[#allocation7 + $0x358] sm:$0xff] }
 0x1c2   :  { %1564 = vmatpush.msrb.mxu1 %v1366_v37  ;;  %1582 = vmatpush.msrb.mxu2 %v1402_v39  ;;  %v1426_v37 = vld [vmem:[#allocation7 + $0x348] sm:$0xff] }
 0x1c3   :  { %1545 = vmatpush.msrb.mxu0 %v1332_v41  ;;  %1527 = vmatpush.msra.mxu3 %v1423_v22  ;;  %v1422_v39 = vld [vmem:[#allocation7 + $0x328] sm:$0xff]  ;;  %v1638_v22 = vld [vmem:[%s2274_s5 + $0xa8] sm:$0xff] }
 0x1c4   :  { %1565 = vmatpush.msrb.mxu1 %v1364_v42  ;;  %1583 = vmatpush.msrb.mxu2 %v1400_v44  ;;  %v1418_v41 = vld [vmem:[#allocation7 + $0x308] sm:$0xff]  ;;  %v651_v42 = vperm.slane %v2131_v2, 3 }
 0x1c5   :  { %1546 = vmatpush.msrb.mxu0 %v1330_v45  ;;  %1528 = vmatpush.msra.mxu3 %v1421_v32  ;;  %v1632_v2 = vld [vmem:[%s2274_s5 + $0x78] sm:$0xff]  ;;  %v1639_v18 = vld [vmem:[%s2274_s5 + $0xb0] sm:$0xff]  ;;  %v1637_v32 = vld [vmem:[%s2274_s5 + $0xa0] sm:$0xff] }
 0x1c6   :  { %1566 = vmatpush.msrb.mxu1 %v1362_v25  ;;  %1584 = vmatpush.msrb.mxu2 %v1398_v49  ;;  %v1114_v7 = vpop.f32.mrf.mxu1  ;;  %v1648_v56 = vld [vmem:[%s2274_s5 + $0xf8] sm:$0xff] }
 0x1c7   :  { %1547 = vmatpush.msrb.mxu0 %v1328_v27  ;;  %v1115_v11 = vadd.f32 %v1114_v7, %v1095_v6  ;;  %v1134_v12 = vpop.f32.mrf.mxu2  ;;  %1529 = vmatpush.msra.mxu3 %v1419_v54  ;;  %v1626_v6 = vld [vmem:[%s2274_s5 + $0x48] sm:$0xff]  ;;  %v1636_v54 = vld [vmem:[%s2274_s5 + $0x98] sm:$0xff] }
 0x1c8   :  { %1567 = vmatpush.msrb.mxu1 %v1360_v9  ;;  %1585 = vmatpush.msrb.mxu2 %v1396_v51  ;;  %v1642_v7 = vld [vmem:[%s2274_s5 + $0xc8] sm:$0xff] }
 0x1c9   :  { %1548 = vmatpush.msrb.mxu0 %v1326_v33  ;;  %v1135_v15 = vadd.f32 %v1134_v12, %v1115_v11  ;;  %v1624_v11 = vld [vmem:[%s2274_s5 + $0x38] sm:$0xff] }
 0x1ca   :  { %1568 = vmatpush.msrb.mxu1 %v1358_v46  ;;  %1586 = vmatpush.msrb.mxu2 %v1394_v57  ;;  %v1154_v16 = vpop.f32.mrf.mxu3  ;;  %v1630_v57 = vld [vmem:[%s2274_s5 + $0x68] sm:$0xff]  ;;  %v1640_v12 = vld [vmem:[%s2274_s5 + $0xb8] sm:$0xff] }
 0x1cb   :  { %1549 = vmatpush.msrb.mxu0 %v1324_v61  ;;  %v1155_v20 = vadd.f32 %v1154_v16, %v1135_v15  ;;  %v1646_v61 = vld [vmem:[%s2274_s5 + $0xe8] sm:$0xff]  ;;  %v1621_v15 = vld [vmem:[%s2274_s5 + $0x20] sm:$0xff]  ;;  %v1620_v16 = vld [vmem:[%s2274_s5 + $0x18] sm:$0xff] }
 0x1cc   :  { %1569 = vmatpush.msrb.mxu1 %v1356_v53  ;;  %1587 = vmatpush.msrb.mxu2 %v1392_v63  ;;  %v1629_v53 = vld [vmem:[%s2274_s5 + $0x60] sm:$0xff]  ;;  %v1628_v63 = vld [vmem:[%s2274_s5 + $0x58] sm:$0xff] }
 0x1cd   :  { %1550 = vmatpush.msrb.mxu0 %v1322_v4  ;;  %v1319_v23 = vmax.f32 %v1155_v20, 0.0  ;;  %v1627_v4 = vld [vmem:[%s2274_s5 + $0x50] sm:$0xff]  ;;  %v1618_v20 = vld [vmem:[%s2274_s5 + $0x8] sm:$0xff] }
 0x1ce   :  { %1570 = vmatpush.msrb.mxu1 %v1354_v5  ;;  %1551 = vmatmul.f32.vlgmr.msrb.gmra.mxu0 %v1317_v59  ;;  %v1417_v59 = vld [vmem:[#allocation7 + $0x300] sm:$0xff] }
 0x1cf   :  { %1571 = vmatmul.f32.vlgmr.msrb.gmra.mxu1 %v1318_v60  ;;  %1588 = vmatpush.msrb.mxu2 %v1390_v8  ;;  %v1448_v60 = vld [vmem:[#allocation7 + $0x3f8] sm:$0xff]  ;;  %v1643_v5 = vld [vmem:[%s2274_s5 + $0xd0] sm:$0xff] }
 0x1d0   :  { %1511 = vmatmul.f32.vlgmr.msra.gmra.mxu2 %v1319_v23  ;;  %1530 = vmatpush.msra.mxu3 %v1417_v59  ;;  %v1625_v8 = vld [vmem:[%s2274_s5 + $0x40] sm:$0xff]  ;;  %v1635_v59 = vld [vmem:[%s2274_s5 + $0x90] sm:$0xff] }
 0x1d1   :  { %1589 = vmatpush.msrb.mxu2 %v1388_v13  ;;  %1653 = vmatpush.msra.mxu0 %v1632_v2  ;;  %v1623_v13 = vld [vmem:[%s2274_s5 + $0x30] sm:$0xff] }
 0x1d2   :  { %1595 = vmatpush.msrb.mxu3 %v1448_v60  ;;  %1673 = vmatpush.msra.mxu1 %v1648_v56  ;;  %v1634_v60 = vld [vmem:[%s2274_s5 + $0x88] sm:$0xff] }
 0x1d3   :  { %1590 = vmatpush.msrb.mxu2 %v1386_v17  ;;  %1654 = vmatpush.msra.mxu0 %v1631_v55  ;;  %v1619_v17 = vld [vmem:[%s2274_s5 + $0x10] sm:$0xff] }
 0x1d4   :  { %1596 = vmatpush.msrb.mxu3 %v1446_v19  ;;  %1674 = vmatpush.msra.mxu1 %v1647_v58  ;;  %v1633_v19 = vld [vmem:[%s2274_s5 + $0x80] sm:$0xff] }
 0x1d5   :  { %1655 = vmatpush.msra.mxu0 %v1630_v57 }
 0x1d6   :  { %1597 = vmatpush.msrb.mxu3 %v1444_v24  ;;  %1675 = vmatpush.msra.mxu1 %v1646_v61  ;;  %v1449_v24 = vld [vmem:[#allocation8] sm:$0x3] }
 0x1d7   :  { %1656 = vmatpush.msra.mxu0 %v1629_v53 }
 0x1d8   :  { %1591 = vmatmul.f32.vlgmr.msrb.gmra.mxu2 %v1319_v23  ;;  %1598 = vmatpush.msrb.mxu3 %v1442_v29  ;;  %v1617_v23 = vld [vmem:[%s2274_s5] sm:$0xff]  ;;  %v1451_v29 = vperm.slane %v1449_v24, 0  ;;  %s1999_s5 = smov [#allocation14]  }
 0x1d9   :  { %1676 = vmatpush.msra.mxu1 %v1645_v62  ;;  %1657 = vmatpush.msra.mxu0 %v1628_v63  ;;  %s1740_s27 = sshll.u32 %s1999_s5, 4  ;;  %s1741_s27 = int_to_ptr.vmem [resolvable:$true] %s1740_s27 }
 0x1da   :  { %1599 = vmatpush.msrb.mxu3 %v1440_v30 }
 0x1db   :  { %1677 = vmatpush.msra.mxu1 %v1644_v0  ;;  %1658 = vmatpush.msra.mxu0 %v1627_v4 }
 0x1dc   :  { %1600 = vmatpush.msrb.mxu3 %v1438_v3 }
 0x1dd   :  { %1678 = vmatpush.msra.mxu1 %v1643_v5  ;;  %1659 = vmatpush.msra.mxu0 %v1626_v6 }
 0x1de   :  { %1601 = vmatpush.msrb.mxu3 %v1436_v34 }
 0x1df   :  { %1679 = vmatpush.msra.mxu1 %v1642_v7  ;;  %1660 = vmatpush.msra.mxu0 %v1625_v8 }
 0x1e0   :  { %1602 = vmatpush.msrb.mxu3 %v1434_v1 }
 0x1e1   :  { %1680 = vmatpush.msra.mxu1 %v1641_v10  ;;  %1661 = vmatpush.msra.mxu0 %v1624_v11  ;;  %v1769_v11 = vld [vmem:[#allocation11] ss:$0 sm:$0xff] }
 0x1e2   :  { %1603 = vmatpush.msrb.mxu3 %v1432_v35 }
 0x1e3   :  { %1681 = vmatpush.msra.mxu1 %v1640_v12  ;;  %1662 = vmatpush.msra.mxu0 %v1623_v13  ;;  %v1770_v13 = vld [vmem:[#allocation13] ss:$0 sm:$0xff] }
 0x1e4   :  { %1604 = vmatpush.msrb.mxu3 %v1430_v36  ;;  %v1452_v36 = vperm.slane %v1449_v24, 1 }
 0x1e5   :  { %1663 = vmatpush.msra.mxu0 %v1622_v14  ;;  %1682 = vmatpush.msra.mxu1 %v1639_v18 }
 0x1e6   :  { %1605 = vmatpush.msrb.mxu3 %v1428_v31 }
 0x1e7   :  { %1664 = vmatpush.msra.mxu0 %v1621_v15  ;;  %1683 = vmatpush.msra.mxu1 %v1638_v22 }
 0x1e8   :  { %1606 = vmatpush.msrb.mxu3 %v1426_v37 }
 0x1e9   :  { %1665 = vmatpush.msra.mxu0 %v1620_v16  ;;  %1684 = vmatpush.msra.mxu1 %v1637_v32 }
 0x1ea   :  { %1607 = vmatpush.msrb.mxu3 %v1424_v38 }
 0x1eb   :  { %1666 = vmatpush.msra.mxu0 %v1619_v17  ;;  %1685 = vmatpush.msra.mxu1 %v1636_v54 }
 0x1ec   :  { %1608 = vmatpush.msrb.mxu3 %v1422_v39 }
 0x1ed   :  { %1667 = vmatpush.msra.mxu0 %v1618_v20  ;;  %1686 = vmatpush.msra.mxu1 %v1635_v59 }
 0x1ee   :  { %1609 = vmatpush.msrb.mxu3 %v1420_v40 }
 0x1ef   :  { %1668 = vmatpush.msra.mxu0 %v1617_v23  ;;  %1687 = vmatpush.msra.mxu1 %v1634_v60 }
 0x1f0   :  { %1610 = vmatpush.msrb.mxu3 %v1418_v41 }
 0x1f1   :  { %1688 = vmatpush.msra.mxu1 %v1633_v19 }
 0x1fc   :  { %v1174_v43 = vpop.f32.mrf.mxu0 }
 0x1fd   :  { %v1175_v44 = vadd.f32 %v1174_v43, %v651_v42  ;;  %v1194_v28 = vpop.f32.mrf.mxu1 }
 0x1ff   :  { %v1195_v45 = vadd.f32 %v1194_v28, %v1175_v44 }
 0x200   :  { %v1214_v25 = vpop.f32.mrf.mxu2 }
 0x201   :  { %v1215_v21 = vadd.f32 %v1214_v25, %v1195_v45  ;;  %v1234_v47 = vpop.f32.mrf.mxu3 }
 0x203   :  { %v1235_v48 = vadd.f32 %v1234_v47, %v1215_v21  ;;  %v1768_v47 = vld [vmem:[#allocation10] ss:$0 sm:$0xff] }
 0x209   :  { %v1274_v27 = vpop.f32.mrf.mxu1 }
 0x20f   :  { %v1254_v49 = vpop.f32.mrf.mxu0 }
 0x210   :  { %v1255_v26 = vadd.f32 %v1254_v49, %v1235_v48  ;;  %v1294_v50 = vpop.f32.mrf.mxu2 }
 0x212   :  { %v1275_v9 = vadd.f32 %v1274_v27, %v1255_v26 }
 0x214   :  { %v1295_v51 = vadd.f32 %v1294_v50, %v1275_v9  ;;  %v1314_v52 = vpop.f32.mrf.mxu3  ;;  %v1998_v50 = vmov 32.0  }
 0x215   :  { %1771 = vrcp.f32 %v1998_v50 }
 0x216   :  { %v1315_v33 = vadd.f32 %v1314_v52, %v1295_v51 }
 0x218   :  { %v1320_v46 = vmax.f32 %v1315_v33, 0.0 }
 0x21a   :  { %1531 = vmatmul.f32.vlgmr.msra.gmra.mxu3 %v1320_v46 }
 0x21b   :  { %v1772_v51 = vpop.eup %1771 }
 0x21c   :  { %v1698_v52 = vmul.f32 32.0, %v1772_v51  ;;  %vm1702_vm1 = vweird.f32 %v1772_v51 }
 0x21e   :  { %v1699_v33 = vsub.f32 1.0, %v1698_v52 }
 0x222   :  { %1611 = vmatmul.f32.vlgmr.msrb.gmra.mxu3 %v1320_v46  ;;  %v1700_v46 = vmul.f32 %v1772_v51, %v1699_v33 }
 0x224   :  { %v1701_v2 = vadd.f32 %v1772_v51, %v1700_v46 }
 0x226   :  { %v1703_v55 = vsel %vm1702_vm1, %v1772_v51, %v1701_v2 }
 0x22b   :  { %v1472_v30 = vpop.f32.mrf.mxu0 }
 0x22c   :  { %v1473_v3 = vadd.f32 %v1472_v30, %v1451_v29  ;;  %v1492_v1 = vpop.f32.mrf.mxu1 }
 0x22e   :  { %v1493_v35 = vadd.f32 %v1492_v1, %v1473_v3 }
 0x24b   :  { %v1552_v31 = vpop.f32.mrf.mxu0 }
 0x24c   :  { %v1553_v39 = vadd.f32 %v1552_v31, %v1452_v36  ;;  %v1572_v42 = vpop.f32.mrf.mxu1 }
 0x24e   :  { %v1573_v44 = vadd.f32 %v1572_v42, %v1553_v39 }
 0x253   :  { %v1512_v34 = vpop.f32.mrf.mxu2 }
 0x254   :  { %v1513_v37 = vadd.f32 %v1512_v34, %v1493_v35 }
 0x25b   :  { %v1592_v43 = vpop.f32.mrf.mxu2 }
 0x25c   :  { %v1593_v28 = vadd.f32 %v1592_v43, %v1573_v44 }
 0x29d   :  { %v1532_v38 = vpop.f32.mrf.mxu3 }
 0x29e   :  { %v1533_v40 = vadd.f32 %v1532_v38, %v1513_v37 }
 0x2a0   :  { %v1615_v41 = vmax.f32 %v1533_v40, 0.0 }
 0x2a2   :  { %1669 = vmatmul.f32.vlgmr.msra.gmra.mxu0 %v1615_v41 }
 0x2a5   :  { %v1612_v45 = vpop.f32.mrf.mxu3 }
 0x2a6   :  { %v1613_v25 = vadd.f32 %v1612_v45, %v1593_v28 }
 0x2a8   :  { %v1616_v21 = vmax.f32 %v1613_v25, 0.0 }
 0x2aa   :  { %1689 = vmatmul.f32.vlgmr.msra.gmra.mxu1 %v1616_v21 }
 0x31f   :  { %v1670_v48 = vpop.f32.mrf.mxu0 }
 0x320   :  { %v1671_v49 = vadd.f32 %v1768_v47, %v1670_v48 }
 0x327   :  { %v1690_v26 = vpop.f32.mrf.mxu1 }
 0x328   :  { %v1691_v27 = vadd.f32 %v1690_v26, %v1671_v49 }
 0x32a   :  { %v1694_v9 = vsel %vm1693_vm0, %v1691_v27, 0.0 }
 0x32b   :  { %1695 = vadd.xlane.f32.xlu0 %v1694_v9 }
 0x39e   :  { %v1696_v56 = vpop.xlane.xlu0 %1695 }
 0x39f   :  { %v1704_v57 = vmul.f32 %v1703_v55, %v1696_v56 }
 0x3a1   :  { %v1705_v58 = vsub.f32 %v1691_v27, %v1704_v57 }
 0x3a3   :  { %v1706_v61 = vmul.f32 %v1705_v58, %v1705_v58 }
 0x3a5   :  { %v1707_v53 = vsel %vm1693_vm0, %v1706_v61, 0.0 }
 0x3a6   :  { %1708 = vadd.xlane.f32.xlu0 %v1707_v53 }
 0x419   :  { %v1709_v62 = vpop.xlane.xlu0 %1708 }
 0x41a   :  { %v1710_v63 = vmul.f32 %v1709_v62, %v1703_v55 }
 0x41c   :  { %v1711_v0 = vadd.f32 1e-05, %v1710_v63 }
 0x41e   :  { %1773 = vrsqrt.f32 %v1711_v0  ;;  %vm1718_vm3 = vweird.f32 %v1711_v0 }
 0x424   :  { %v1774_v4 = vpop.eup %1773 }
 0x425   :  { %v1713_v5 = vmul.f32 %v1774_v4, %v1711_v0  ;;  %vm1719_vm2 = vweird.f32 %v1774_v4 }
 0x426   :  { %vm1720_vm4 = vmor %vm1718_vm3, %vm1719_vm2 }
 0x427   :  { %v1714_v6 = vmul.f32 %v1774_v4, %v1713_v5 }
 0x429   :  { %v1715_v7 = vmul.f32 0.5, %v1714_v6 }
 0x42b   :  { %v1716_v8 = vsub.f32 1.5, %v1715_v7 }
 0x42d   :  { %v1717_v10 = vmul.f32 %v1774_v4, %v1716_v8 }
 0x42f   :  { %v1721_v12 = vsel %vm1720_vm4, %v1774_v4, %v1717_v10 }
 0x430   :  { %v1722_v14 = vmul.f32 %v1721_v12, %v1705_v58 }
 0x432   :  { %v1727_v15 = vmul.f32 %v1769_v11, %v1722_v14 }
 0x434   :  { %v1732_v16 = vadd.f32 %v1770_v13, %v1727_v15 }
 0x436   :  { %1775 = vtanh.f32 %v1732_v16 }
 0x43c   :  { %v1776_v17 = vpop.eup %1775 }
 0x43d   :  { %1734 = vst.msk [vmem:[#allocation14] sm:$0x3] %vm1693_vm0, %v1776_v17 }
 0x43e   :  { %1745 = dma.vmem_to_hbm [thread:$0]  %s1741_s27, 32, %s1743_s7, [#allocation4]  }
 0x43f   :  { %1985 = dma.done.wait [#allocation4], 32  }
 0x440   :  { %1986 = vsyncadd [#allocation4], 4294967264 }
 0x441   :  { %1750 = vsyncpa [#allocation3], 1 }
 0x442   :  { %1751 = vsyncpa [#allocation6], 1 }
 0x443   :  { %1752 = vsyncpa [#allocation9], 1 }
 0x444   :  { %1753 = vsyncpa [#allocation12], 1 }
 0x445   :  { %1754 = vsyncpa [#allocation4], 1 }

</bundles_post_ra>
